<compile_context>
chip_gen: v7x
topology: tpu7x:2x2x1
jax: 0.10.0
libtpu: 0.0.40
codegen_flags: <defaults>
</compile_context>

<pallas_src>
import functools

import jax
import jax.numpy as jnp
from jax.experimental import pallas as pl
from jax.experimental.pallas import tpu as pltpu


# ---------------------------------------------------------------------------
# Pallas kernel
# ---------------------------------------------------------------------------
def _single_attention_kernel(
    m_ref,      # [1, N, C]      raw single embedding (whole sequence, one batch), f32
    zb_ref,     # [1, H, TQ, N]  pair-bias tile with the mask bias folded in, bf16
    lnw_ref,    # [1, C]         layer_norm_m weight, f32
    lnb_ref,    # [1, C]         layer_norm_m bias, f32
    wq_ref,     # [C, H*D]       fused Q weights (1/sqrt(D) folded in), bf16
    wkv_ref,    # [C, 2*H*D]     fused K|V weights, bf16
    wg_ref,     # [C, H*D]       fused gating weights, bf16
    bg_ref,     # [1, H*D]       gating bias, f32
    wo_ref,     # [H*D, C]       output weights, bf16
    bo_ref,     # [1, C]         output bias, f32
    out_ref,    # [1, TQ, C]     f32
    mln_sc,     # VMEM [N, C]       bf16  layer-normed m (per batch)
    kv_sc,      # VMEM [N, 2*H*D]   bf16  K | V, lane-dense (per batch)
    *,
    no_heads: int,
    c_hidden: int,
    q_tile: int,
    bf16_exp: bool,
):
    H, D, TQ = no_heads, c_hidden, q_tile
    HD = H * D
    i = pl.program_id(1)

    # Once per batch element (query-tile axis is "arbitrary", so i runs in
    # order on one core): layer_norm_m + fused K/V projection for the whole
    # sequence, stored in VMEM scratch and reused by every query tile.
    # TODO(synk): if the tile axis is ever made core-parallel (v7x megacore with
    # B < 2), this init must run at each core's first owned tile instead.
    @pl.when(i == 0)
    def _():
        m = m_ref[0].astype(jnp.float32)                          # [N, C]
        mu = jnp.mean(m, axis=-1, keepdims=True)
        var = jnp.mean((m - mu) ** 2, axis=-1, keepdims=True)
        m_ln = (m - mu) * jax.lax.rsqrt(var + 1e-5) * lnw_ref[0] + lnb_ref[0]
        m_b = m_ln.astype(jnp.bfloat16)
        mln_sc[...] = m_b
        # One wide MXU matmul producing K and V together: [N, C] @ [C, 2*H*D].
        kv_sc[...] = jnp.dot(
            m_b, wkv_ref[...], preferred_element_type=jnp.float32
        ).astype(jnp.bfloat16)

    # ---------------- per query tile ----------------
    row0 = pl.multiple_of(i * TQ, TQ)
    mq = mln_sc[pl.ds(row0, TQ), :]                               # [TQ, C] bf16

    # Fused projections: one matmul each for Q (1/sqrt(D) pre-folded) and gate.
    q_all = jnp.dot(mq, wq_ref[...],
                    preferred_element_type=jnp.float32).astype(jnp.bfloat16)
    g_all = jax.nn.sigmoid(
        jnp.dot(mq, wg_ref[...], preferred_element_type=jnp.float32) + bg_ref[0]
    )                                                             # [TQ, H*D] f32

    # Per-head attention core: keeps live f32 temporaries at [TQ, N].
    o_heads = []
    for h in range(H):                                            # static unroll (H small)
        q_h = q_all[:, h * D:(h + 1) * D]                         # [TQ, D] bf16
        k_h = kv_sc[:, h * D:(h + 1) * D]                         # [N, D]  bf16
        v_h = kv_sc[:, HD + h * D: HD + (h + 1) * D]              # [N, D]  bf16

        s = jnp.einsum("qd,kd->qk", q_h, k_h,
                       preferred_element_type=jnp.float32)        # [TQ, N] f32
        s = s + zb_ref[0, h].astype(jnp.float32)                  # pair + mask bias
        s = s - jnp.max(s, axis=-1, keepdims=True)
        if bf16_exp:                                              # bf16 EUP path (v6e/v7x)
            p = jnp.exp(s.astype(jnp.bfloat16))
        else:                                                     # f32 path (v5e & older)
            p = jnp.exp(s).astype(jnp.bfloat16)
        denom = jnp.sum(p, axis=-1, keepdims=True, dtype=jnp.float32)   # [TQ, 1]
        o_h = jnp.dot(p, v_h, preferred_element_type=jnp.float32)       # [TQ, D]
        o_heads.append(o_h / denom)                               # normalize after PV

    o_all = jnp.concatenate(o_heads, axis=-1)                     # [TQ, H*D] f32
    o_all = (o_all * g_all).astype(jnp.bfloat16)
    out = jnp.dot(o_all, wo_ref[...],
                  preferred_element_type=jnp.float32) + bo_ref[0]        # [TQ, C]
    out_ref[0] = out.astype(out_ref.dtype)


# ---------------------------------------------------------------------------
# Wrapper
# ---------------------------------------------------------------------------
def _layernorm(x, w, b, eps=1e-5):
    mu = jnp.mean(x, axis=-1, keepdims=True)
    var = jnp.mean((x - mu) ** 2, axis=-1, keepdims=True)
    return (x - mu) / jnp.sqrt(var + eps) * w + b


def _pick_q_tile(n_res, no_heads, vmem_budget):
    """Largest query tile that divides N and keeps the double-buffered bf16
    pair-bias block plus the per-head f32 transients inside the VMEM budget."""
    cands = [t for t in (512, 256, 128, 64, 32, 16, 8)
             if t <= n_res and n_res % t == 0]
    if not cands:
        # TODO(synk): no padding/masking path for N not divisible by 8.
        return n_res

    def cost(t):
        zb_db = 2 * 2 * no_heads * t * n_res      # bf16 bias tile, double-buffered
        transients = 8 * 4 * t * n_res            # f32 score/prob temporaries + slack
        return zb_db + transients

    for t in cands:                               # prefer >= 2 tiles (pipelining)
        if cost(t) <= vmem_budget and n_res // t >= 2:
            return t
    for t in cands:
        if cost(t) <= vmem_budget:
            return t
    return cands[-1]


def single_attention_forward(m, z, mask, params, *, no_heads, c_hidden, inf=1e9):
    B, N, C = m.shape
    H, D = no_heads, c_hidden
    HD = H * D
    bf16 = jnp.bfloat16

    # Generation-aware VMEM budgeting.
    try:
        vmem_cap = int(pltpu.get_tpu_info().vmem_capacity_bytes)
    except Exception:
        vmem_cap = 64 * 1024 * 1024
    TQ = _pick_q_tile(N, H, vmem_cap // 3)
    n_tq = N // TQ

    # bf16 softmax-exp only where the EUP has a bf16 path (v6e / v7x).
    try:
        kind = jax.devices()[0].device_kind.lower()
    except Exception:
        kind = ""
    bf16_exp = not any(tag in kind for tag in ("v2", "v3", "v4", "v5"))

    # Pair-bias branch (layer_norm_z -> linear_z -> permute) with the mask bias
    # folded in, emitted as a single bf16 [B, H, N, N] tensor: z is read once,
    # the bias is written/read at 2 B/head/pair.  (See module TODO for why the
    # projection is not fused into the kernel.)
    mask_bias = (inf * (mask - 1.0)).astype(jnp.float32)          # [B, N]
    z_ln = _layernorm(z, params["lnz_w"], params["lnz_b"])
    z_bias = jnp.einsum("bijc,ch->bhij", z_ln, params["wz"])      # [B, H, N, N]
    bias = (z_bias + mask_bias[:, None, None, :]).astype(bf16)

    # Fused weight layouts (head-major columns, matching the reference reshape).
    scale = 1.0 / (D ** 0.5)
    wq = (params["wq"] * scale).astype(bf16)                      # [C, H*D]
    wkv = jnp.concatenate([params["wk"], params["wv"]], axis=-1).astype(bf16)  # [C, 2*H*D]
    wg = params["wg"].astype(bf16)                                # [C, H*D]
    bg = params["bg"].reshape(1, HD).astype(jnp.float32)
    wo = params["wo"].astype(bf16)                                # [H*D, C]
    bo = params["bo"].reshape(1, C).astype(jnp.float32)
    lnw = params["lnm_w"].reshape(1, C).astype(jnp.float32)
    lnb = params["lnm_b"].reshape(1, C).astype(jnp.float32)

    # Explicit VMEM limit sized from the actual blocks/scratch/transients.
    est_vmem = (
        2 * 2 * H * TQ * N          # pair-bias tile, bf16, double-buffered
        + 2 * 4 * N * C             # m block, f32, double-buffered
        + 2 * 4 * TQ * C            # out block, f32, double-buffered
        + 2 * N * C                 # mln scratch, bf16
        + 2 * N * 2 * HD            # K|V scratch, bf16
        + 8 * 4 * TQ * N            # f32 score/prob transients + slack
        + (4 << 20)                 # weights / misc headroom
    )
    vmem_limit = min(int(vmem_cap * 0.9), max(int(est_vmem * 1.25), 32 << 20))

    kernel = functools.partial(
        _single_attention_kernel,
        no_heads=H, c_hidden=D, q_tile=TQ, bf16_exp=bf16_exp)

    in_specs = [
        pl.BlockSpec((1, N, C), lambda b, i: (b, 0, 0)),          # m (resident per batch)
        pl.BlockSpec((1, H, TQ, N), lambda b, i: (b, 0, i, 0)),   # pair+mask bias tile
        pl.BlockSpec((1, C), lambda b, i: (0, 0)),                # ln_m weight
        pl.BlockSpec((1, C), lambda b, i: (0, 0)),                # ln_m bias
        pl.BlockSpec((C, HD), lambda b, i: (0, 0)),               # wq (scaled)
        pl.BlockSpec((C, 2 * HD), lambda b, i: (0, 0)),           # wk|wv
        pl.BlockSpec((C, HD), lambda b, i: (0, 0)),               # wg
        pl.BlockSpec((1, HD), lambda b, i: (0, 0)),               # bg
        pl.BlockSpec((HD, C), lambda b, i: (0, 0)),               # wo
        pl.BlockSpec((1, C), lambda b, i: (0, 0)),                # bo
    ]

    return pl.pallas_call(
        kernel,
        out_shape=jax.ShapeDtypeStruct((B, N, C), jnp.float32),
        grid=(B, n_tq),
        in_specs=in_specs,
        out_specs=pl.BlockSpec((1, TQ, C), lambda b, i: (b, i, 0)),
        scratch_shapes=[
            pltpu.VMEM((N, C), bf16),          # layer-normed m (per batch)
            pltpu.VMEM((N, 2 * HD), bf16),     # K | V, lane-dense (per batch)
        ],
        compiler_params=pltpu.CompilerParams(
            dimension_semantics=("parallel", "arbitrary"),
            vmem_limit_bytes=vmem_limit),
    )(m, bias, lnw, lnb, wq, wkv, wg, bg, wo, bo)


# ---------------------------------------------------------------------------
# Pure-JAX reference (mirrors the PyTorch forward exactly, f32)
# ---------------------------------------------------------------------------
def single_attention_reference(m, z, mask, params, *, no_heads, c_hidden, inf=1e9):
    B, N, C = m.shape
    HD = no_heads * c_hidden

    mask_bias = (inf * (mask - 1.0))[:, None, None, :]            # [B,1,1,N]
    z_ln = _layernorm(z, params["lnz_w"], params["lnz_b"])
    z_bias = jnp.einsum("bijc,ch->bhij", z_ln, params["wz"])      # [B,H,N,N]

    m_ln = _layernorm(m, params["lnm_w"][0], params["lnm_b"][0])

    q = (m_ln @ params["wq"]) / (c_hidden ** 0.5)
    k = m_ln @ params["wk"]
    v = m_ln @ params["wv"]

    def split_heads(x):  # [B,N,H*D] -> [B,H,N,D]
        return x.reshape(B, N, no_heads, c_hidden).transpose(0, 2, 1, 3)

    qh, kh, vh = split_heads(q), split_heads(k), split_heads(v)
    s = jnp.einsum("bhqd,bhkd->bhqk", qh, kh) + mask_bias + z_bias
    p = jax.nn.softmax(s, axis=-1)
    o = jnp.einsum("bhqk,bhkd->bhqd", p, vh)                      # [B,H,N,D]
    o = o.transpose(0, 2, 1, 3).reshape(B, N, HD)

    g = jax.nn.sigmoid(m_ln @ params["wg"] + params["bg"][0])
    o = o * g
    return o @ params["wo"] + params["bo"][0]


# ---------------------------------------------------------------------------
# Main
# ---------------------------------------------------------------------------
if __name__ == "__main__":
    # SingleAttention(c_in=32, c_hidden=16, no_heads=4, pair_bias=True, c_z=8)
    B, N, C_m, C_z = 2, 32, 32, 8
    no_heads, c_hidden = 4, 16
    HD = no_heads * c_hidden

    key = jax.random.PRNGKey(0)
    ks = jax.random.split(key, 14)

    def glorot(k, shape):
        fan_in, fan_out = shape
        lim = (6.0 / (fan_in + fan_out)) ** 0.5
        return jax.random.uniform(k, shape, jnp.float32, -lim, lim)

    # Deterministic synthetic parameters (module __init__ gives shapes only).
    params = {
        "lnm_w": (1.0 + 0.1 * jax.random.normal(ks[0], (1, C_m))).astype(jnp.float32),
        "lnm_b": (0.1 * jax.random.normal(ks[1], (1, C_m))).astype(jnp.float32),
        "lnz_w": (1.0 + 0.1 * jax.random.normal(ks[2], (C_z,))).astype(jnp.float32),
        "lnz_b": (0.1 * jax.random.normal(ks[3], (C_z,))).astype(jnp.float32),
        "wz":    glorot(ks[4], (C_z, no_heads)),       # linear_z (bias=False)
        "wq":    glorot(ks[5], (C_m, HD)),
        "wk":    glorot(ks[6], (C_m, HD)),
        "wv":    glorot(ks[7], (C_m, HD)),
        "wg":    glorot(ks[8], (C_m, HD)),
        "bg":    (0.1 * jax.random.normal(ks[9], (1, HD))).astype(jnp.float32),
        "wo":    glorot(ks[10], (HD, C_m)),
        "bo":    (0.1 * jax.random.normal(ks[11], (1, C_m))).astype(jnp.float32),
    }

    m = jax.random.normal(ks[12], (B, N, C_m), jnp.float32)
    z = jax.random.normal(ks[13], (B, N, N, C_z), jnp.float32)
    mask = jnp.ones((B, N), jnp.float32)
    mask = mask.at[1, -3:].set(0.0)   # exercise the mask-bias path

    out = single_attention_forward(
        m, z, mask, params, no_heads=no_heads, c_hidden=c_hidden
    )
    out = jax.block_until_ready(out)

    ref = single_attention_reference(
        m, z, mask, params, no_heads=no_heads, c_hidden=c_hidden
    )
    assert out.shape == (B, N, C_m)
    # bf16 matmul / bf16-exp path -> wider tolerance than pure f32.
    assert jnp.allclose(out, ref, atol=5e-2, rtol=5e-2), (
        float(jnp.max(jnp.abs(out - ref)))
    )
    print("KERNEL_OK")
</pallas_src>

<mosaic_0001>
module attributes {stable_mosaic.version = 11 : i64} {
  func.func @_single_attention_kernel(%arg0: i32, %arg1: i32, %arg2: memref<1x32x32xf32, #tpu.memory_space<vmem>>, %arg3: memref<1x4x16x32xbf16, #tpu.memory_space<vmem>>, %arg4: memref<1x32xf32, #tpu.memory_space<vmem>>, %arg5: memref<1x32xf32, #tpu.memory_space<vmem>>, %arg6: memref<32x64xbf16, #tpu.memory_space<vmem>>, %arg7: memref<32x128xbf16, #tpu.memory_space<vmem>>, %arg8: memref<32x64xbf16, #tpu.memory_space<vmem>>, %arg9: memref<1x64xf32, #tpu.memory_space<vmem>>, %arg10: memref<64x32xbf16, #tpu.memory_space<vmem>>, %arg11: memref<1x32xf32, #tpu.memory_space<vmem>>, %arg12: memref<1x16x32xf32, #tpu.memory_space<vmem>>, %arg13: memref<32x32xbf16, #tpu.memory_space<vmem>>, %arg14: memref<32x128xbf16, #tpu.memory_space<vmem>>) attributes {dimension_semantics = [#tpu.dimension_semantics<parallel>, #tpu.dimension_semantics<arbitrary>], iteration_bounds = array<i64: 2, 2>, scalar_prefetch = 0 : i64, scratch_operands = 2 : i64, tpu.core_type = #tpu.core_type<tc>, window_params = [{transform_indices = @transform_0, window_bounds = array<i64: 1, 32, 32>}, {transform_indices = @transform_1, window_bounds = array<i64: 1, 4, 16, 32>}, {pipeline_mode = #tpu.pipeline_mode<synchronous>, transform_indices = @transform_2, window_bounds = array<i64: 1, 32>}, {pipeline_mode = #tpu.pipeline_mode<synchronous>, transform_indices = @transform_3, window_bounds = array<i64: 1, 32>}, {pipeline_mode = #tpu.pipeline_mode<synchronous>, transform_indices = @transform_4, window_bounds = array<i64: 32, 64>}, {pipeline_mode = #tpu.pipeline_mode<synchronous>, transform_indices = @transform_5, window_bounds = array<i64: 32, 128>}, {pipeline_mode = #tpu.pipeline_mode<synchronous>, transform_indices = @transform_6, window_bounds = array<i64: 32, 64>}, {pipeline_mode = #tpu.pipeline_mode<synchronous>, transform_indices = @transform_7, window_bounds = array<i64: 1, 64>}, {pipeline_mode = #tpu.pipeline_mode<synchronous>, transform_indices = @transform_8, window_bounds = array<i64: 64, 32>}, {pipeline_mode = #tpu.pipeline_mode<synchronous>, transform_indices = @transform_9, window_bounds = array<i64: 1, 32>}, {transform_indices = @transform_10, window_bounds = array<i64: 1, 16, 32>}]} {
    %c0_i32 = arith.constant 0 : i32
    %0 = arith.cmpi eq, %arg1, %c0_i32 : i32
    %1 = arith.extui %0 : i1 to i32
    %c0_i32_0 = arith.constant 0 : i32
    %2 = arith.cmpi ne, %1, %c0_i32_0 : i32
    scf.if %2 {
      %c0_55 = arith.constant 0 : index
      %c0_56 = arith.constant 0 : index
      %c0_57 = arith.constant 0 : index
      %115 = vector.load %arg2[%c0_55, %c0_56, %c0_57] : memref<1x32x32xf32, #tpu.memory_space<vmem>>, vector<1x32x32xf32>
      %116 = vector.shape_cast %115 : vector<1x32x32xf32> to vector<32x32xf32>
      %cst_58 = arith.constant dense<0.000000e+00> : vector<32xf32>
      %117 = vector.multi_reduction <add>, %116, %cst_58 [1] : vector<32x32xf32> to vector<32xf32>
      %118 = vector.shape_cast %117 : vector<32xf32> to vector<32x1xf32>
      %cst_59 = arith.constant 3.200000e+01 : f32
      %119 = vector.broadcast %cst_59 : f32 to vector<32x1xf32>
      %120 = arith.divf %118, %119 : vector<32x1xf32>
      %121 = vector.broadcast %120 : vector<32x1xf32> to vector<32x32xf32>
      %122 = arith.subf %116, %121 : vector<32x32xf32>
      %123 = arith.mulf %122, %122 : vector<32x32xf32>
      %cst_60 = arith.constant dense<0.000000e+00> : vector<32xf32>
      %124 = vector.multi_reduction <add>, %123, %cst_60 [1] : vector<32x32xf32> to vector<32xf32>
      %125 = vector.shape_cast %124 : vector<32xf32> to vector<32x1xf32>
      %cst_61 = arith.constant 3.200000e+01 : f32
      %126 = vector.broadcast %cst_61 : f32 to vector<32x1xf32>
      %127 = arith.divf %125, %126 : vector<32x1xf32>
      %128 = vector.broadcast %120 : vector<32x1xf32> to vector<32x32xf32>
      %129 = arith.subf %116, %128 : vector<32x32xf32>
      %cst_62 = arith.constant 9.99999974E-6 : f32
      %130 = vector.broadcast %cst_62 : f32 to vector<32x1xf32>
      %131 = arith.addf %127, %130 : vector<32x1xf32>
      %132 = math.rsqrt %131 : vector<32x1xf32>
      %133 = vector.broadcast %132 : vector<32x1xf32> to vector<32x32xf32>
      %134 = arith.mulf %129, %133 : vector<32x32xf32>
      %c0_63 = arith.constant 0 : index
      %c0_64 = arith.constant 0 : index
      %135 = vector.load %arg4[%c0_63, %c0_64] : memref<1x32xf32, #tpu.memory_space<vmem>>, vector<1x32xf32>
      %136 = vector.shape_cast %135 : vector<1x32xf32> to vector<32xf32>
      %137 = vector.shape_cast %136 : vector<32xf32> to vector<1x32xf32>
      %138 = vector.broadcast %137 : vector<1x32xf32> to vector<32x32xf32>
      %139 = arith.mulf %134, %138 : vector<32x32xf32>
      %c0_65 = arith.constant 0 : index
      %c0_66 = arith.constant 0 : index
      %140 = vector.load %arg5[%c0_65, %c0_66] : memref<1x32xf32, #tpu.memory_space<vmem>>, vector<1x32xf32>
      %141 = vector.shape_cast %140 : vector<1x32xf32> to vector<32xf32>
      %142 = vector.shape_cast %141 : vector<32xf32> to vector<1x32xf32>
      %143 = vector.broadcast %142 : vector<1x32xf32> to vector<32x32xf32>
      %144 = arith.addf %139, %143 : vector<32x32xf32>
      %145 = arith.truncf %144 : vector<32x32xf32> to vector<32x32xbf16>
      %c0_67 = arith.constant 0 : index
      %c0_68 = arith.constant 0 : index
      %146 = vector.load %arg13[%c0_67, %c0_68] : memref<32x32xbf16, #tpu.memory_space<vmem>>, vector<32x32xbf16>
      tpu.vector_store %arg13[%c0_67, %c0_68], %145 {strides = array<i32>} : memref<32x32xbf16, #tpu.memory_space<vmem>>, vector<32x32xbf16>,
      %c0_69 = arith.constant 0 : index
      %c0_70 = arith.constant 0 : index
      %147 = vector.load %arg7[%c0_69, %c0_70] : memref<32x128xbf16, #tpu.memory_space<vmem>>, vector<32x128xbf16>
      %cst_71 = arith.constant dense<0.000000e+00> : vector<32x128xf32>
      %148 = tpu.matmul %145, %147, %cst_71 {dimension_numbers = #tpu.dot_dimension_numbers<[1], [0], [0], [1], [0, 0, 1, 1], [], []>} : vector<32x32xbf16>, vector<32x128xbf16>, vector<32x128xf32> -> vector<32x128xf32>
      %149 = arith.truncf %148 : vector<32x128xf32> to vector<32x128xbf16>
      %c0_72 = arith.constant 0 : index
      %c0_73 = arith.constant 0 : index
      %150 = vector.load %arg14[%c0_72, %c0_73] : memref<32x128xbf16, #tpu.memory_space<vmem>>, vector<32x128xbf16>
      tpu.vector_store %arg14[%c0_72, %c0_73], %149 {strides = array<i32>} : memref<32x128xbf16, #tpu.memory_space<vmem>>, vector<32x128xbf16>,
    } else {
    }
    %c16_i32 = arith.constant 16 : i32
    %3 = arith.muli %arg1, %c16_i32 : i32
    %4 = tpu.assume_multiple %3, 16 : i32
    %5 = arith.index_cast %4 : i32 to index
    %c0 = arith.constant 0 : index
    %6 = vector.load %arg13[%5, %c0] : memref<32x32xbf16, #tpu.memory_space<vmem>>, vector<16x32xbf16>
    %c0_1 = arith.constant 0 : index
    %c0_2 = arith.constant 0 : index
    %7 = vector.load %arg6[%c0_1, %c0_2] : memref<32x64xbf16, #tpu.memory_space<vmem>>, vector<32x64xbf16>
    %cst = arith.constant dense<0.000000e+00> : vector<16x64xf32>
    %8 = tpu.matmul %6, %7, %cst {dimension_numbers = #tpu.dot_dimension_numbers<[1], [0], [0], [1], [0, 0, 1, 1], [], []>} : vector<16x32xbf16>, vector<32x64xbf16>, vector<16x64xf32> -> vector<16x64xf32>
    %9 = arith.truncf %8 : vector<16x64xf32> to vector<16x64xbf16>
    %c0_3 = arith.constant 0 : index
    %c0_4 = arith.constant 0 : index
    %10 = vector.load %arg8[%c0_3, %c0_4] : memref<32x64xbf16, #tpu.memory_space<vmem>>, vector<32x64xbf16>
    %cst_5 = arith.constant dense<0.000000e+00> : vector<16x64xf32>
    %11 = tpu.matmul %6, %10, %cst_5 {dimension_numbers = #tpu.dot_dimension_numbers<[1], [0], [0], [1], [0, 0, 1, 1], [], []>} : vector<16x32xbf16>, vector<32x64xbf16>, vector<16x64xf32> -> vector<16x64xf32>
    %c0_6 = arith.constant 0 : index
    %c0_7 = arith.constant 0 : index
    %12 = vector.load %arg9[%c0_6, %c0_7] : memref<1x64xf32, #tpu.memory_space<vmem>>, vector<1x64xf32>
    %13 = vector.shape_cast %12 : vector<1x64xf32> to vector<64xf32>
    %14 = vector.shape_cast %13 : vector<64xf32> to vector<1x64xf32>
    %15 = vector.broadcast %14 : vector<1x64xf32> to vector<16x64xf32>
    %16 = arith.addf %11, %15 : vector<16x64xf32>
    %17 = arith.negf %16 : vector<16x64xf32>
    %18 = math.exp %17 : vector<16x64xf32>
    %cst_8 = arith.constant 1.000000e+00 : f32
    %19 = vector.broadcast %cst_8 : f32 to vector<16x64xf32>
    %20 = arith.addf %19, %18 : vector<16x64xf32>
    %21 = arith.divf %19, %20 : vector<16x64xf32>
    %22 = vector.extract_strided_slice %9 {offsets = [0, 0], sizes = [16, 16], strides = [1, 1]} : vector<16x64xbf16> to vector<16x16xbf16>
    %c0_9 = arith.constant 0 : index
    %c0_10 = arith.constant 0 : index
    %23 = vector.load %arg14[%c0_9, %c0_10] : memref<32x128xbf16, #tpu.memory_space<vmem>>, vector<32x16xbf16>
    %c0_11 = arith.constant 0 : index
    %c64 = arith.constant 64 : index
    %24 = vector.load %arg14[%c0_11, %c64] : memref<32x128xbf16, #tpu.memory_space<vmem>>, vector<32x16xbf16>
    "tpu.trace_start"() <{level = 10 : i32, message = "qd,kd->qk"}> : () -> ()
    %cst_12 = arith.constant dense<0.000000e+00> : vector<16x32xf32>
    %25 = tpu.matmul %22, %23, %cst_12 {dimension_numbers = #tpu.dot_dimension_numbers<[1], [1], [0], [0], [0, 0, 1, 0], [], []>} : vector<16x16xbf16>, vector<32x16xbf16>, vector<16x32xf32> -> vector<16x32xf32>
    "tpu.trace_stop"() : () -> ()
    %c0_13 = arith.constant 0 : index
    %c0_14 = arith.constant 0 : index
    %c0_15 = arith.constant 0 : index
    %c0_16 = arith.constant 0 : index
    %26 = vector.load %arg3[%c0_13, %c0_14, %c0_15, %c0_16] : memref<1x4x16x32xbf16, #tpu.memory_space<vmem>>, vector<1x1x16x32xbf16>
    %27 = vector.shape_cast %26 : vector<1x1x16x32xbf16> to vector<16x32xbf16>
    %28 = arith.extf %27 : vector<16x32xbf16> to vector<16x32xf32>
    %29 = arith.addf %25, %28 : vector<16x32xf32>
    %cst_17 = arith.constant dense<0xFF800000> : vector<16xf32>
    %30 = vector.multi_reduction <maximumf>, %29, %cst_17 [1] : vector<16x32xf32> to vector<16xf32>
    %31 = vector.shape_cast %30 : vector<16xf32> to vector<16x1xf32>
    %32 = vector.broadcast %31 : vector<16x1xf32> to vector<16x32xf32>
    %33 = arith.subf %29, %32 : vector<16x32xf32>
    %34 = arith.truncf %33 : vector<16x32xf32> to vector<16x32xbf16>
    %35 = math.exp %34 : vector<16x32xbf16>
    %36 = arith.extf %35 : vector<16x32xbf16> to vector<16x32xf32>
    %cst_18 = arith.constant dense<0.000000e+00> : vector<16xf32>
    %37 = vector.multi_reduction <add>, %36, %cst_18 [1] : vector<16x32xf32> to vector<16xf32>
    %38 = vector.shape_cast %37 : vector<16xf32> to vector<16x1xf32>
    %cst_19 = arith.constant dense<0.000000e+00> : vector<16x16xf32>
    %39 = tpu.matmul %35, %24, %cst_19 {dimension_numbers = #tpu.dot_dimension_numbers<[1], [0], [0], [1], [0, 0, 1, 1], [], []>} : vector<16x32xbf16>, vector<32x16xbf16>, vector<16x16xf32> -> vector<16x16xf32>
    %40 = vector.broadcast %38 : vector<16x1xf32> to vector<16x16xf32>
    %41 = arith.divf %39, %40 : vector<16x16xf32>
    %42 = vector.extract_strided_slice %9 {offsets = [0, 16], sizes = [16, 16], strides = [1, 1]} : vector<16x64xbf16> to vector<16x16xbf16>
    %c0_20 = arith.constant 0 : index
    %c16 = arith.constant 16 : index
    %43 = vector.load %arg14[%c0_20, %c16] : memref<32x128xbf16, #tpu.memory_space<vmem>>, vector<32x16xbf16>
    %c0_21 = arith.constant 0 : index
    %c80 = arith.constant 80 : index
    %44 = vector.load %arg14[%c0_21, %c80] : memref<32x128xbf16, #tpu.memory_space<vmem>>, vector<32x16xbf16>
    "tpu.trace_start"() <{level = 10 : i32, message = "qd,kd->qk"}> : () -> ()
    %cst_22 = arith.constant dense<0.000000e+00> : vector<16x32xf32>
    %45 = tpu.matmul %42, %43, %cst_22 {dimension_numbers = #tpu.dot_dimension_numbers<[1], [1], [0], [0], [0, 0, 1, 0], [], []>} : vector<16x16xbf16>, vector<32x16xbf16>, vector<16x32xf32> -> vector<16x32xf32>
    "tpu.trace_stop"() : () -> ()
    %c0_23 = arith.constant 0 : index
    %c1 = arith.constant 1 : index
    %c0_24 = arith.constant 0 : index
    %c0_25 = arith.constant 0 : index
    %46 = vector.load %arg3[%c0_23, %c1, %c0_24, %c0_25] : memref<1x4x16x32xbf16, #tpu.memory_space<vmem>>, vector<1x1x16x32xbf16>
    %47 = vector.shape_cast %46 : vector<1x1x16x32xbf16> to vector<16x32xbf16>
    %48 = arith.extf %47 : vector<16x32xbf16> to vector<16x32xf32>
    %49 = arith.addf %45, %48 : vector<16x32xf32>
    %cst_26 = arith.constant dense<0xFF800000> : vector<16xf32>
    %50 = vector.multi_reduction <maximumf>, %49, %cst_26 [1] : vector<16x32xf32> to vector<16xf32>
    %51 = vector.shape_cast %50 : vector<16xf32> to vector<16x1xf32>
    %52 = vector.broadcast %51 : vector<16x1xf32> to vector<16x32xf32>
    %53 = arith.subf %49, %52 : vector<16x32xf32>
    %54 = arith.truncf %53 : vector<16x32xf32> to vector<16x32xbf16>
    %55 = math.exp %54 : vector<16x32xbf16>
    %56 = arith.extf %55 : vector<16x32xbf16> to vector<16x32xf32>
    %cst_27 = arith.constant dense<0.000000e+00> : vector<16xf32>
    %57 = vector.multi_reduction <add>, %56, %cst_27 [1] : vector<16x32xf32> to vector<16xf32>
    %58 = vector.shape_cast %57 : vector<16xf32> to vector<16x1xf32>
    %cst_28 = arith.constant dense<0.000000e+00> : vector<16x16xf32>
    %59 = tpu.matmul %55, %44, %cst_28 {dimension_numbers = #tpu.dot_dimension_numbers<[1], [0], [0], [1], [0, 0, 1, 1], [], []>} : vector<16x32xbf16>, vector<32x16xbf16>, vector<16x16xf32> -> vector<16x16xf32>
    %60 = vector.broadcast %58 : vector<16x1xf32> to vector<16x16xf32>
    %61 = arith.divf %59, %60 : vector<16x16xf32>
    %62 = vector.extract_strided_slice %9 {offsets = [0, 32], sizes = [16, 16], strides = [1, 1]} : vector<16x64xbf16> to vector<16x16xbf16>
    %c0_29 = arith.constant 0 : index
    %c32 = arith.constant 32 : index
    %63 = vector.load %arg14[%c0_29, %c32] : memref<32x128xbf16, #tpu.memory_space<vmem>>, vector<32x16xbf16>
    %c0_30 = arith.constant 0 : index
    %c96 = arith.constant 96 : index
    %64 = vector.load %arg14[%c0_30, %c96] : memref<32x128xbf16, #tpu.memory_space<vmem>>, vector<32x16xbf16>
    "tpu.trace_start"() <{level = 10 : i32, message = "qd,kd->qk"}> : () -> ()
    %cst_31 = arith.constant dense<0.000000e+00> : vector<16x32xf32>
    %65 = tpu.matmul %62, %63, %cst_31 {dimension_numbers = #tpu.dot_dimension_numbers<[1], [1], [0], [0], [0, 0, 1, 0], [], []>} : vector<16x16xbf16>, vector<32x16xbf16>, vector<16x32xf32> -> vector<16x32xf32>
    "tpu.trace_stop"() : () -> ()
    %c0_32 = arith.constant 0 : index
    %c2 = arith.constant 2 : index
    %c0_33 = arith.constant 0 : index
    %c0_34 = arith.constant 0 : index
    %66 = vector.load %arg3[%c0_32, %c2, %c0_33, %c0_34] : memref<1x4x16x32xbf16, #tpu.memory_space<vmem>>, vector<1x1x16x32xbf16>
    %67 = vector.shape_cast %66 : vector<1x1x16x32xbf16> to vector<16x32xbf16>
    %68 = arith.extf %67 : vector<16x32xbf16> to vector<16x32xf32>
    %69 = arith.addf %65, %68 : vector<16x32xf32>
    %cst_35 = arith.constant dense<0xFF800000> : vector<16xf32>
    %70 = vector.multi_reduction <maximumf>, %69, %cst_35 [1] : vector<16x32xf32> to vector<16xf32>
    %71 = vector.shape_cast %70 : vector<16xf32> to vector<16x1xf32>
    %72 = vector.broadcast %71 : vector<16x1xf32> to vector<16x32xf32>
    %73 = arith.subf %69, %72 : vector<16x32xf32>
    %74 = arith.truncf %73 : vector<16x32xf32> to vector<16x32xbf16>
    %75 = math.exp %74 : vector<16x32xbf16>
    %76 = arith.extf %75 : vector<16x32xbf16> to vector<16x32xf32>
    %cst_36 = arith.constant dense<0.000000e+00> : vector<16xf32>
    %77 = vector.multi_reduction <add>, %76, %cst_36 [1] : vector<16x32xf32> to vector<16xf32>
    %78 = vector.shape_cast %77 : vector<16xf32> to vector<16x1xf32>
    %cst_37 = arith.constant dense<0.000000e+00> : vector<16x16xf32>
    %79 = tpu.matmul %75, %64, %cst_37 {dimension_numbers = #tpu.dot_dimension_numbers<[1], [0], [0], [1], [0, 0, 1, 1], [], []>} : vector<16x32xbf16>, vector<32x16xbf16>, vector<16x16xf32> -> vector<16x16xf32>
    %80 = vector.broadcast %78 : vector<16x1xf32> to vector<16x16xf32>
    %81 = arith.divf %79, %80 : vector<16x16xf32>
    %82 = vector.extract_strided_slice %9 {offsets = [0, 48], sizes = [16, 16], strides = [1, 1]} : vector<16x64xbf16> to vector<16x16xbf16>
    %c0_38 = arith.constant 0 : index
    %c48 = arith.constant 48 : index
    %83 = vector.load %arg14[%c0_38, %c48] : memref<32x128xbf16, #tpu.memory_space<vmem>>, vector<32x16xbf16>
    %c0_39 = arith.constant 0 : index
    %c112 = arith.constant 112 : index
    %84 = vector.load %arg14[%c0_39, %c112] : memref<32x128xbf16, #tpu.memory_space<vmem>>, vector<32x16xbf16>
    "tpu.trace_start"() <{level = 10 : i32, message = "qd,kd->qk"}> : () -> ()
    %cst_40 = arith.constant dense<0.000000e+00> : vector<16x32xf32>
    %85 = tpu.matmul %82, %83, %cst_40 {dimension_numbers = #tpu.dot_dimension_numbers<[1], [1], [0], [0], [0, 0, 1, 0], [], []>} : vector<16x16xbf16>, vector<32x16xbf16>, vector<16x32xf32> -> vector<16x32xf32>
    "tpu.trace_stop"() : () -> ()
    %c0_41 = arith.constant 0 : index
    %c3 = arith.constant 3 : index
    %c0_42 = arith.constant 0 : index
    %c0_43 = arith.constant 0 : index
    %86 = vector.load %arg3[%c0_41, %c3, %c0_42, %c0_43] : memref<1x4x16x32xbf16, #tpu.memory_space<vmem>>, vector<1x1x16x32xbf16>
    %87 = vector.shape_cast %86 : vector<1x1x16x32xbf16> to vector<16x32xbf16>
    %88 = arith.extf %87 : vector<16x32xbf16> to vector<16x32xf32>
    %89 = arith.addf %85, %88 : vector<16x32xf32>
    %cst_44 = arith.constant dense<0xFF800000> : vector<16xf32>
    %90 = vector.multi_reduction <maximumf>, %89, %cst_44 [1] : vector<16x32xf32> to vector<16xf32>
    %91 = vector.shape_cast %90 : vector<16xf32> to vector<16x1xf32>
    %92 = vector.broadcast %91 : vector<16x1xf32> to vector<16x32xf32>
    %93 = arith.subf %89, %92 : vector<16x32xf32>
    %94 = arith.truncf %93 : vector<16x32xf32> to vector<16x32xbf16>
    %95 = math.exp %94 : vector<16x32xbf16>
    %96 = arith.extf %95 : vector<16x32xbf16> to vector<16x32xf32>
    %cst_45 = arith.constant dense<0.000000e+00> : vector<16xf32>
    %97 = vector.multi_reduction <add>, %96, %cst_45 [1] : vector<16x32xf32> to vector<16xf32>
    %98 = vector.shape_cast %97 : vector<16xf32> to vector<16x1xf32>
    %cst_46 = arith.constant dense<0.000000e+00> : vector<16x16xf32>
    %99 = tpu.matmul %95, %84, %cst_46 {dimension_numbers = #tpu.dot_dimension_numbers<[1], [0], [0], [1], [0, 0, 1, 1], [], []>} : vector<16x32xbf16>, vector<32x16xbf16>, vector<16x16xf32> -> vector<16x16xf32>
    %100 = vector.broadcast %98 : vector<16x1xf32> to vector<16x16xf32>
    %101 = arith.divf %99, %100 : vector<16x16xf32>
    %102 = tpu.concatenate %41, %61, %81, %101 in 1 : vector<16x16xf32>, vector<16x16xf32>, vector<16x16xf32>, vector<16x16xf32> -> vector<16x64xf32>
    %103 = arith.mulf %102, %21 : vector<16x64xf32>
    %104 = arith.truncf %103 : vector<16x64xf32> to vector<16x64xbf16>
    %c0_47 = arith.constant 0 : index
    %c0_48 = arith.constant 0 : index
    %105 = vector.load %arg10[%c0_47, %c0_48] : memref<64x32xbf16, #tpu.memory_space<vmem>>, vector<64x32xbf16>
    %cst_49 = arith.constant dense<0.000000e+00> : vector<16x32xf32>
    %106 = tpu.matmul %104, %105, %cst_49 {dimension_numbers = #tpu.dot_dimension_numbers<[1], [0], [0], [1], [0, 0, 1, 1], [], []>} : vector<16x64xbf16>, vector<64x32xbf16>, vector<16x32xf32> -> vector<16x32xf32>
    %c0_50 = arith.constant 0 : index
    %c0_51 = arith.constant 0 : index
    %107 = vector.load %arg11[%c0_50, %c0_51] : memref<1x32xf32, #tpu.memory_space<vmem>>, vector<1x32xf32>
    %108 = vector.shape_cast %107 : vector<1x32xf32> to vector<32xf32>
    %109 = vector.shape_cast %108 : vector<32xf32> to vector<1x32xf32>
    %110 = vector.broadcast %109 : vector<1x32xf32> to vector<16x32xf32>
    %111 = arith.addf %106, %110 : vector<16x32xf32>
    %c0_52 = arith.constant 0 : index
    %c0_53 = arith.constant 0 : index
    %c0_54 = arith.constant 0 : index
    %112 = vector.load %arg12[%c0_52, %c0_53, %c0_54] : memref<1x16x32xf32, #tpu.memory_space<vmem>>, vector<1x16x32xf32>
    %113 = vector.shape_cast %112 : vector<1x16x32xf32> to vector<16x32xf32>
    %114 = vector.shape_cast %111 : vector<16x32xf32> to vector<1x16x32xf32>
    tpu.vector_store %arg12[%c0_52, %c0_53, %c0_54], %114 {strides = array<i32>} : memref<1x16x32xf32, #tpu.memory_space<vmem>>, vector<1x16x32xf32>,
    return
  }
  func.func @transform_0(%arg0: i32, %arg1: i32) -> (i32, i32, i32) {
    %c0_i32 = arith.constant 0 : i32
    %c0_i32_0 = arith.constant 0 : i32
    %c0_i32_1 = arith.constant 0 : i32
    return %arg0, %c0_i32, %c0_i32_0 : i32, i32, i32
  }
  func.func @transform_1(%arg0: i32, %arg1: i32) -> (i32, i32, i32, i32) {
    %c0_i32 = arith.constant 0 : i32
    %c0_i32_0 = arith.constant 0 : i32
    %c0_i32_1 = arith.constant 0 : i32
    return %arg0, %c0_i32, %arg1, %c0_i32_0 : i32, i32, i32, i32
  }
  func.func @transform_2(%arg0: i32, %arg1: i32) -> (i32, i32) {
    %c0_i32 = arith.constant 0 : i32
    %c0_i32_0 = arith.constant 0 : i32
    %c0_i32_1 = arith.constant 0 : i32
    return %c0_i32, %c0_i32_0 : i32, i32
  }
  func.func @transform_3(%arg0: i32, %arg1: i32) -> (i32, i32) {
    %c0_i32 = arith.constant 0 : i32
    %c0_i32_0 = arith.constant 0 : i32
    %c0_i32_1 = arith.constant 0 : i32
    return %c0_i32, %c0_i32_0 : i32, i32
  }
  func.func @transform_4(%arg0: i32, %arg1: i32) -> (i32, i32) {
    %c0_i32 = arith.constant 0 : i32
    %c0_i32_0 = arith.constant 0 : i32
    %c0_i32_1 = arith.constant 0 : i32
    return %c0_i32, %c0_i32_0 : i32, i32
  }
  func.func @transform_5(%arg0: i32, %arg1: i32) -> (i32, i32) {
    %c0_i32 = arith.constant 0 : i32
    %c0_i32_0 = arith.constant 0 : i32
    %c0_i32_1 = arith.constant 0 : i32
    return %c0_i32, %c0_i32_0 : i32, i32
  }
  func.func @transform_6(%arg0: i32, %arg1: i32) -> (i32, i32) {
    %c0_i32 = arith.constant 0 : i32
    %c0_i32_0 = arith.constant 0 : i32
    %c0_i32_1 = arith.constant 0 : i32
    return %c0_i32, %c0_i32_0 : i32, i32
  }
  func.func @transform_7(%arg0: i32, %arg1: i32) -> (i32, i32) {
    %c0_i32 = arith.constant 0 : i32
    %c0_i32_0 = arith.constant 0 : i32
    %c0_i32_1 = arith.constant 0 : i32
    return %c0_i32, %c0_i32_0 : i32, i32
  }
  func.func @transform_8(%arg0: i32, %arg1: i32) -> (i32, i32) {
    %c0_i32 = arith.constant 0 : i32
    %c0_i32_0 = arith.constant 0 : i32
    %c0_i32_1 = arith.constant 0 : i32
    return %c0_i32, %c0_i32_0 : i32, i32
  }
  func.func @transform_9(%arg0: i32, %arg1: i32) -> (i32, i32) {
    %c0_i32 = arith.constant 0 : i32
    %c0_i32_0 = arith.constant 0 : i32
    %c0_i32_1 = arith.constant 0 : i32
    return %c0_i32, %c0_i32_0 : i32, i32
  }
  func.func @transform_10(%arg0: i32, %arg1: i32) -> (i32, i32, i32) {
    %c0_i32 = arith.constant 0 : i32
    %c0_i32_0 = arith.constant 0 : i32
    return %arg0, %arg1, %c0_i32 : i32, i32, i32
  }
}

</mosaic_0001>

<bundles_post_ra>
// kernel: tpu_custom_call.1
= control target key start
LH: loop header
LB: loop body
LE: loop exit
PB: predicated region body
PF: predicated region fallthrough
CT: control target
= control target key end

     0   :  { %s2689_s0 = inlined_call_operand.hbm [shape: f32[2,32,32], index: 0, kind: input, shape index: {}]   ;;  %s2690_s1 = inlined_call_operand.hbm [shape: bf16[2,4,32,32], index: 1, kind: input, shape index: {}]   ;;  %s2691_s2 = inlined_call_operand.vmem [shape: f32[1,32], index: 2, kind: input, shape index: {}]   ;;  %s2692_s3 = inlined_call_operand.vmem [shape: f32[1,32], index: 3, kind: input, shape index: {}]   ;;  %s2693_s4 = inlined_call_operand.vmem [shape: bf16[32,64], index: 4, kind: input, shape index: {}]   ;;  %s2694_s5 = inlined_call_operand.vmem [shape: bf16[32,128], index: 5, kind: input, shape index: {}]   ;;  %s2695_s6 = inlined_call_operand.vmem [shape: bf16[32,64], index: 6, kind: input, shape index: {}]   ;;  %s2696_s7 = inlined_call_operand.vmem [shape: f32[1,64], index: 7, kind: input, shape index: {}]   ;;  %s2697_s8 = inlined_call_operand.vmem [shape: bf16[64,32], index: 8, kind: input, shape index: {}]   ;;  %s2698_s9 = inlined_call_operand.vmem [shape: f32[1,32], index: 9, kind: input, shape index: {}]   ;;  %s2699_s10 = inlined_call_operand.hbm [shape: f32[2,32,32], index: 10, kind: output, shape index: {}]  }
   0x1   :  { %2710 = sst [smem:[#allocation24_spill]] %s2689_s0 }
   0x2   :  { %2711 = sst [smem:[#allocation25_spill]] %s2696_s7 }
   0x3   :  { %2712 = sst [smem:[#allocation26_spill]] %s2697_s8 }
   0x4   :  { %2713 = sst [smem:[#allocation27_spill]] %s2698_s9 }
   0x5   :  { %2714 = sst [smem:[#allocation28_spill]] %s2699_s10 }
   0x6   :  { %15 = vsyncpa [#allocation5], 0 }
   0x7   :  { %17 = vsyncpa [#allocation5 + $0x1], 0 }
   0x8   :  { %18 = vsyncpa [#allocation8], 0 }
   0x9   :  { %20 = vsyncpa [#allocation8 + $0x1], 0 }
   0xa   :  { %21 = vsyncpa [#allocation6], 0 }
   0xb   :  { %23 = vsyncpa [#allocation6 + $0x1], 0  ;;  %s2200_s13 = smov 0   ;;  %s2202_s14 = smov 0  }
   0xc   :  { %s2204_s15 = smov 0   ;;  %s2206_s16 = smov 0  }
   0xd   :  { %s2208_s17 = smov 0   ;;  %s2210_s18 = smov 0  }
   0xe   :  { %s2212_s19 = smov 0   ;;  %s2214_s20 = smov 0  }
   0xf   :  { %s2216_s21 = smov 0   ;;  %s2218_s22 = smov 0  }
  0x10   :  { %s2220_s23 = smov 0  }
  0x11 LB: > { %2715 = sst [smem:[#allocation16_spill]] %s2082_s13  ;;  %s1573_s24 = sadd.s32 4294967295, %s2122_s23   ;;  %s2122_s23 = sphi %s2220_s23, %s29_s23   ;;  %s2118_s22 = sphi %s2218_s22, %s2755_s22   ;;  %s2114_s21 = sphi %s2216_s21, %s2754_s21   ;;  %s2110_s20 = sphi %s2214_s20, %s2753_s20   ;;  %s2106_s19 = sphi %s2212_s19, %s2752_s19   ;;  %s2102_s18 = sphi %s2210_s18, %s2744_s18   ;;  %s2098_s17 = sphi %s2208_s17, %s2751_s17   ;;  %s2094_s16 = sphi %s2206_s16, %s2750_s16   ;;  %s2090_s15 = sphi %s2204_s15, %s2749_s15   ;;  %s2086_s14 = sphi %s2202_s14, %s2748_s14   ;;  %s2082_s13 = sphi %s2200_s13, %s2747_s13  }
  0x12   : > { %2716 = sst [smem:[#allocation17_spill]] %s2102_s18  ;;  %s1574_s25 = sadd.s32 4294967294, %s2122_s23  }
  0x13   : > { %2717 = sst [smem:[#allocation18_spill]] %s2110_s20  ;;  %s38_s26 = sadd.s32 1, %s2114_s21 }
  0x14   : > { %s41_s27 = sadd.s32 1, %s2118_s22  ;;  %p39_p0 = scmp.ge.s32.totalorder %s38_s26, 2 }
  0x15   : > { %s48_s28 = sadd.s32 1, %s2102_s18  ;;  %p55_p1 = scmp.ne.s32.totalorder %s2102_s18, %s2098_s17 }
  0x16   : > { %p56_p2 = scmp.eq.s32.totalorder %s2122_s23, 0  ;;  %s2757_s26 = smov (%p39_p0, %s38_s26), 0 }
  0x17   : > { %2718 = sst [smem:[#allocation19_spill]] %s2757_s26  ;;  %s2759_s27 = smov (!%p39_p0, %s41_s27), %s2118_s22 }
  0x18   : > { %p2266_p3 = por %p56_p2, %p55_p1  ;;  %p61_p4 = scmp.ne.s32.totalorder %s2098_s17, %s2094_s16 }
  0x19   : > { %p43_p5 = scmp.ge.s32.totalorder %s2759_s27, 2  ;;  %p2271_p6 = scmp.eq.s32.totalorder %s1573_s24, 0 }
  0x1a   : > { %s72_s11 = ssub.s32 %s2114_s21, %s2757_s26  ;;  %s76_s12 = sadd.s32 1, %s2090_s15 }
  0x1b   : > { %s2761_s27 = smov (%p43_p5, %s2759_s27), 0  ;;  %p2282_p7 = por %p2271_p6, %p61_p4 }
  0x1c   : > { %2721 = sst [smem:[#allocation20_spill]] %s2761_s27  ;;  %p83_p8 = scmp.ne.s32.totalorder %s2090_s15, %s2086_s14 }
  0x1d   : > { %s2722_s10 = scalar_select %p2282_p7, 1, 0 }
  0x1e   : > { %s45_s9 = ssub.s32 %s2118_s22, %s2761_s27  ;;  %p89_p9 = scmp.ne.s32.totalorder %s2086_s14, %s2082_s13 }
  0x1f   : > { %p46_p10 = scmp.eq.s32.totalorder %s45_s9, 0  ;;  %s73_s16 = sor.u32 %s72_s11, %s45_s9 }
  0x20   : > { %p74_p11 = scmp.eq.s32.totalorder %s73_s16, 0  ;;  %p2294_p12 = por %p83_p8, %p56_p2 }
  0x21   : > { %s2299_s26 = scalar_select %p46_p10, %s2102_s18, %s48_s28  }
  0x22   : > { %s2302_s7 = scalar_select %p74_p11, %s2090_s15, %s76_s12  }
  0x23   : > { %2724 = sst [smem:[#allocation21_spill]] %s2299_s26  ;;  %p2306_p13 = por %p89_p9, %p2271_p6 }
  0x24   : > { %2725 = sst [smem:[#allocation22_spill]] %s2302_s7  ;;  %p283_p0 = scmp.eq.s32.totalorder %s1573_s24, 3 }
  0x25   : > { %s2726_s8 = scalar_select %p2306_p13, 1, 0 }
  0x26   : > { %p289_p1 = scmp.eq.s32.totalorder %s1574_s25, 3  ;;  %p2310_p4 = por %p283_p0, %p83_p8 }
  0x27   : > { %p1576_p2 = scmp.ge.s32.totalorder %s2122_s23, 4 }
  0x28   : > { %s2727_s27 = scalar_select %p2310_p4, 1, 0 }
  0x29   : > { %p2314_p5 = por %p289_p1, %p89_p9  ;;  %329 = sbr.rel (%p1576_p2) target bundleno = 89 (0x59), region = 48 }
  0x2a   : > { %s333_s28 = sand.u32 (!%p1576_p2), 1, %s2102_s18   ;;  %s1634_s30 = sshll.u32 (!%p1576_p2), %s2118_s22, 9 }
  0x2b   : > { %s2728_s9 = scalar_select %p2314_p5, 1, 0 }
  0x2c   : > { %s1577_s11 = sshll.u32 (!%p1576_p2), %s333_s28, 5  ;;  %s2730_s0 = sld [smem:[#allocation24_spill]] (!%p1576_p2) }
  0x2d   : > { %2729 = sst [smem:[#allocation23_spill]] %s2728_s9  ;;  %s337_s16 = scalar_lea.vmem (!%p1576_p2), [#allocation4], %s1577_s11 }
  0x2e   : > { %s344_s26 = sshll.u32 (!%p1576_p2), %s337_s16, 4  ;;  %s2328_s7 = scalar_lea.sflag (!%p1576_p2), [#allocation5], %s333_s28  ;;  %s2326_s26 = int_to_ptr.vmem [resolvable:$true] %s344_s26 }
  0x32   : > { %s2324_s25 = scalar_lea.hbm %s2730_s0, %s1634_s30  ;;  %s1972_s30 = scalar_lea.hbm %s2730_s0, 1024 }
  0x33   : > { %s1968_s9 = scalar_lea.hbm %s2324_s25, 512  ;;  %p1973_p10 = scmp.lt.u32.totalorder %s2324_s25, %s2730_s0 }
  0x34   : > { %p1969_p6 = scmp.ne.s32.totalorder %s2324_s25, %s1968_s9  ;;  %p1974_p11 = scmp.lt.u32.totalorder %s1972_s30, %s1968_s9 }
  0x35   : > { %p1976_p1 = scmp.lt.u32.totalorder %s1968_s9, %s2324_s25 }
  0x36   : > { %p1970_p8 = pnand %p1969_p6, %p2266_p3  ;;  %p1975_p0 = por %p1974_p11, %p1973_p10 }
  0x38   : > { %p1971_p9 = pneg %p1970_p8  ;;  %p1977_p2 = por %p1976_p1, %p1975_p0 }
  0x3a   : > { %p1978_p5 = pnand %p1977_p2, %p1971_p9 }
  0x3c   : > { %1981 = shalt.err (!%p1978_p5)
}
  0x3d   : > { %s1982_s28 = scalar_lea.vmem %s2326_s26, 512  ;;  %s2124_s13 = smov [#allocation4]  }
  0x3e   : > { %p1983_p6 = scmp.ne.s32.totalorder %s2326_s26, %s1982_s28  ;;  %s1986_s18 = sshll.u32 %s2124_s13, 4  ;;  %s1987_s18 = int_to_ptr.vmem [resolvable:$false] %s1986_s18 }
  0x3f   : > { %s1988_s11 = scalar_lea.vmem %s1987_s18, 1024  ;;  %p1989_p13 = scmp.lt.s32.totalorder %s2326_s26, %s1987_s18 }
  0x40   : > { %p1984_p8 = pnand %p1983_p6, %p2266_p3  ;;  %p1990_p7 = scmp.lt.s32.totalorder %s1988_s11, %s1982_s28 }
  0x42   : > { %p1985_p4 = pneg %p1984_p8  ;;  %p1991_p10 = por %p1990_p7, %p1989_p13 }
  0x44   : > { %p1992_p11 = pnand %p1991_p10, %p1985_p4 }
  0x46   : > { %1995 = shalt.err (!%p1992_p11)
}
  0x47   : > { %s2125_s9 = smov 128   ;;  %s2126_s16 = smov 8  }
  0x48   : > { %1793 = dma.hbm_to_vmem [thread:$0]  (%p2266_p3), %s2324_s25, 512, %s2326_s26, %s2328_s7, %s2125_s9, %s2125_s9, %s2126_s16  }
  0x49   : > { %s354_s30 = sand.u32 1, %s2090_s15   ;;  %s1581_s12 = sshll.u32 %s2114_s21, 1 }
  0x4a   : > { %s1580_s24 = sshll.u32 %s354_s30, 5  ;;  %s1582_s28 = sshll.u32 %s2118_s22, 4 }
  0x4b   : > { %s364_s13 = sadd.s32 %s1582_s28, %s1581_s12  ;;  %s358_s18 = scalar_lea.vmem [#allocation7], %s1580_s24 }
  0x4c   : > { %s379_s11 = sshll.u32 %s358_s18, 4  ;;  %s1583_s0 = sshll.u32 %s364_s13, 6  ;;  %s380_s11 = int_to_ptr.vmem [resolvable:$true] %s379_s11 }
  0x4d   : > { %s1794_s7 = scalar_select %p2294_p12, [#allocation0], [#allocation12] }
  0x4e   : > { %s2127_s26 = smov 256   ;;  %s2128_s25 = smov 128  }
  0x4f   : > { %1795 = sst [smem:[#allocation11]] (%p2294_p12), %s2127_s26  ;;  %s2129_s9 = smov 2  }
  0x50   : > { %s371_s29 = sld [smem:[%s1794_s7]]   ;;  %s2130_s16 = smov 64  }
  0x51   : > { %1796 = sst [smem:[#allocation11 + $0x1]] (%p2294_p12), %s2128_s25  ;;  %s366_s28 = scalar_lea.hbm %s2690_s1, %s1583_s0 }
  0x52   : > { %1797 = sst [smem:[#allocation11 + $0x2]] (%p2294_p12), %s2129_s9  ;;  %s2131_s13 = smov 4  }
  0x53   : > { %1798 = sst [smem:[#allocation11 + $0x3]] (%p2294_p12), %s2130_s16  ;;  %s355_s26 = scalar_lea.sflag [#allocation8], %s354_s30 }
  0x54   : > { %1799 = sst [smem:[#allocation11 + $0x4]] (%p2294_p12), %s2130_s16  ;;  %s2132_s25 = smov [#allocation10]  }
  0x55   : > { %1800 = sst [smem:[#allocation11 + $0x5]] (%p2294_p12), %s2131_s13 }
  0x56   : > { %s1584_s18 = sshll.u32 %s371_s29, 26 }
  0x57   : > { %s1585_s7 = sadd.s32 134217728, %s1584_s18 }
  0x58   : > { %1801 = dma.general (%p2294_p12), %s366_s28, 512, %s380_s11, %s355_s26, %s2132_s25, [#allocation11], %s1585_s7, 0  }
  0x59 PF: > { %p1586_p3 = scmp.ge.s32.totalorder %s2122_s23, 1  ;;  %p400_p7 = scmp.lt.s32.totalorder %s2122_s23, 5 }
  0x5b   : > { %p401_p13 = pnand %p1586_p3, %p400_p7 }
  0x5c   : > { %s406_s0 = sand.u32 (!%p401_p13), 1, %s2098_s17   ;;  %p2731_p4 = scmp.ne.s32.totalorder (!%p401_p13), %s2722_s10, 0 }
  0x5d   : > { %404 = sbr.rel (%p401_p13) target bundleno = 2998 (0xbb6), region = 60  ;;  %s1587_s9 = sshll.u32 (!%p401_p13), %s406_s0, 5 }
  0x5e   : > { %s407_s16 = scalar_lea.sflag (!%p401_p13), [#allocation5], %s406_s0  ;;  %s410_s12 = scalar_lea.vmem (!%p401_p13), [#allocation4], %s1587_s9 }
  0x64   : > { %2069 = dma.done.wait (%p2731_p4), %s407_s16, 512  }
  0x65   : > { %2071 = vsyncadd (%p2731_p4), %s407_s16, 4294966784  ;;  %s2382_s20 = sand.u32 1, %s2086_s14   ;;  %p2732_p12 = scmp.ne.s32.totalorder %s2726_s8, 0 }
  0x66   : > { %s1588_s30 = sshll.u32 %s2382_s20, 5  ;;  %s416_s11 = scalar_lea.sflag [#allocation8], %s2382_s20 }
  0x67   : > { %s2386_s29 = scalar_lea.vmem [#allocation7], %s1588_s30 }
  0x68   : > { %2073 = dma.done.wait (%p2732_p12), %s416_s11, 512  }
  0x69   : > { %2075 = vsyncadd (%p2732_p12), %s416_s11, 4294966784  ;;  %s1589_s24 = sshll.u32 %s2382_s20, 4  ;;  %p1590_p5 = scmp.ne.s32.totalorder %s2106_s19, 0 }
  0x6a   : > { %s2393_s28 = scalar_lea.vmem [#allocation9], %s1589_s24  ;;  %v468_v0 = vld [vmem:[%s410_s12] sm:$0xff] (!%p1590_p5)  ;;  %vm472_vm0 = vcmask (!%p1590_p5), 261120   ;;  %v470_v1 = vld [vmem:[%s410_s12 + $0x10] sm:$0xff] (!%p1590_p5)  ;;  %v469_v2 = vld [vmem:[%s410_s12 + $0x8] sm:$0xff] (!%p1590_p5) }
  0x6b   : > { %467 = sbr.rel (%p1590_p5) target bundleno = 648 (0x288), region = 72  ;;  %v473_v3 = vsel (!%p1590_p5), %vm472_vm0, %v468_v0, 0.0  ;;  %v479_v4 = vsel (!%p1590_p5), %vm472_vm0, %v470_v1, 0.0  ;;  %v471_v5 = vld [vmem:[%s410_s12 + $0x18] sm:$0xff] (!%p1590_p5)  ;;  %v476_v6 = vsel (!%p1590_p5), %vm472_vm0, %v469_v2, 0.0  ;;  %v1918_v28 = vld [vmem:[%s2694_s5] sm:$0xff] (!%p1590_p5)  }
  0x6c   : > { %474 = vadd.xlane.f32.xlu0 (!%p1590_p5), %v473_v3  ;;  %480 = vadd.xlane.f32.xlu1 (!%p1590_p5), %v479_v4  ;;  %v482_v7 = vsel (!%p1590_p5), %vm472_vm0, %v471_v5, 0.0  ;;  %v1919_v29 = vld [vmem:[%s2694_s5 + $0x8] sm:$0xff] (!%p1590_p5)   ;;  %v1591_v44 = vld [vmem:[%s2691_s2] ss:$0 sm:$0xff] (!%p1590_p5) }
  0x6d   : > { %1693 = vmatprep.subr.bf16.mxu0 (!%p1590_p5), %v1918_v28  ;;  %v1592_v50 = vld [vmem:[%s2692_s3] ss:$0 sm:$0xff] (!%p1590_p5) }
  0x6e   : > { %1694 = vmatpush3.bf16.msra.mxu0 (!%p1590_p5), %v1918_v28 }
  0x6f   : > { %1695 = vmatprep.subr.bf16.mxu0 (!%p1590_p5), %v1919_v29 }
  0x70   : > { %477 = vadd.xlane.f32.xlu0 (!%p1590_p5), %v476_v6  ;;  %483 = vadd.xlane.f32.xlu1 (!%p1590_p5), %v482_v7 }
  0x72   : > { %1696 = vmatpush3.bf16.msra.mxu0 %v1919_v29 }
  0xf9   : > { %v475_v8 = vpop.xlane.xlu0 %474  ;;  %v481_v9 = vpop.xlane.xlu1 %480 }
  0xfa   : > { %v486_v10 = vmul.f32 0.03125, %v475_v8  ;;  %v488_v11 = vmul.f32 0.03125, %v481_v9 }
  0xfc   : > { %v490_v12 = vsub.f32 %v468_v0, %v486_v10  ;;  %v492_v13 = vsub.f32 %v470_v1, %v488_v11 }
  0xfd   : > { %v478_v14 = vpop.xlane.xlu0 %477  ;;  %v484_v15 = vpop.xlane.xlu1 %483 }
  0xfe   : > { %v487_v16 = vmul.f32 0.03125, %v478_v14  ;;  %v489_v17 = vmul.f32 0.03125, %v484_v15  ;;  %v494_v18 = vmul.f32 %v490_v12, %v490_v12  ;;  %v496_v19 = vmul.f32 %v492_v13, %v492_v13 }
 0x100   : > { %v491_v20 = vsub.f32 %v469_v2, %v487_v16  ;;  %v493_v21 = vsub.f32 %v471_v5, %v489_v17  ;;  %v498_v22 = vsel %vm472_vm0, %v494_v18, 0.0  ;;  %v504_v23 = vsel %vm472_vm0, %v496_v19, 0.0 }
 0x101   : > { %499 = vadd.xlane.f32.xlu0 %v498_v22 }
 0x102   : > { %v495_v24 = vmul.f32 %v491_v20, %v491_v20  ;;  %v497_v25 = vmul.f32 %v493_v21, %v493_v21 }
 0x104   : > { %v501_v26 = vsel %vm472_vm0, %v495_v24, 0.0  ;;  %v507_v27 = vsel %vm472_vm0, %v497_v25, 0.0 }
 0x105   : > { %505 = vadd.xlane.f32.xlu0 %v504_v23  ;;  %502 = vadd.xlane.f32.xlu1 %v501_v26 }
 0x109   : > { %508 = vadd.xlane.f32.xlu1 %v507_v27 }
 0x18e   : > { %v500_v30 = vpop.xlane.xlu0 %499 }
 0x18f   : > { %v510_v31 = vmul.f32 0.03125, %v500_v30 }
 0x191   : > { %v514_v32 = vadd.f32 1e-05, %v510_v31 }
 0x192   : > { %v503_v33 = vpop.xlane.xlu1 %502  ;;  %v506_v34 = vpop.xlane.xlu0 %505 }
 0x193   : > { %1920 = vrsqrt.f32 %v514_v32  ;;  %v511_v35 = vmul.f32 0.03125, %v503_v33  ;;  %v512_v36 = vmul.f32 0.03125, %v506_v34 }
 0x195   : > { %v515_v37 = vadd.f32 1e-05, %v511_v35  ;;  %v516_v38 = vadd.f32 1e-05, %v512_v36 }
 0x196   : > { %v509_v39 = vpop.xlane.xlu1 %508 }
 0x197   : > { %1922 = vrsqrt.f32 %v515_v37  ;;  %v513_v40 = vmul.f32 0.03125, %v509_v39 }
 0x198   : > { %1924 = vrsqrt.f32 %v516_v38 }
 0x199   : > { %v517_v41 = vadd.f32 1e-05, %v513_v40 }
 0x19b   : > { %1926 = vrsqrt.f32 %v517_v41 }
 0x19d   : > { %v1921_v42 = vpop.eup %1920 }
 0x19e   : > { %v522_v43 = vmul.f32 %v1921_v42, %v490_v12 }
 0x1a0   : > { %v533_v48 = vmul.f32 %v1591_v44, %v522_v43 }
 0x1a1   : > { %v1923_v45 = vpop.eup %1922 }
 0x1a2   : > { %v1925_v46 = vpop.eup %1924  ;;  %v523_v47 = vmul.f32 %v1923_v45, %v491_v20  ;;  %v544_v54 = vadd.f32 %v1592_v50, %v533_v48 }
 0x1a3   : > { %v524_v49 = vmul.f32 %v1925_v46, %v492_v13 }
 0x1a4   : > { %v534_v51 = vmul.f32 %v1591_v44, %v523_v47 }
 0x1a5   : > { %v1927_v52 = vpop.eup %1926  ;;  %v535_v56 = vmul.f32 %v1591_v44, %v524_v49 }
 0x1a6   : > { %v525_v53 = vmul.f32 %v1927_v52, %v493_v21  ;;  %v545_v55 = vadd.f32 %v1592_v50, %v534_v51 }
 0x1a7   : > { %v546_v59 = vadd.f32 %v1592_v50, %v535_v56 }
 0x1a8   : > { %v548_v57 = vpack.c.bf16 %v545_v55, %v544_v54  ;;  %v536_v58 = vmul.f32 %v1591_v44, %v525_v53 }
 0x1aa   : > { %550 = vst.msk [vmem:[#allocation2] sm:$0xff] %vm472_vm0, %v548_v57  ;;  %1697 = vmatprep.mubr.msk.bf16.mxu0 %vm472_vm0, %v548_v57  ;;  %v547_v60 = vadd.f32 %v1592_v50, %v536_v58 }
 0x1ac   : > { %v549_v61 = vpack.c.bf16 %v547_v60, %v546_v59 }
 0x1ae   : > { %551 = vst.msk [vmem:[#allocation2 + $0x8] sm:$0xff] %vm472_vm0, %v549_v61  ;;  %1698 = vmatmul.mubr.msk.bf16.vlgmr.msra.gmra.mrb[0].mxu0 %vm472_vm0, %v549_v61 }
 0x281   : > { %v1699_v62 = vpop.f32.mrb[0].mxu0 }
 0x282   : > { %v608_v63 = vpop.f32.mrb[1].mxu0 }
 0x283   : > { %v1700_v0 = vpop.f32.mrb[2].mxu0 }
 0x284   : > { %v624_v1 = vpack.c.bf16 %v1700_v0, %v1699_v62  ;;  %v611_v2 = vpop.f32.mrb[3].mxu0 }
 0x285   : > { %v623_v3 = vpack.c.bf16 %v611_v2, %v608_v63 }
 0x286   : > { %626 = vst [vmem:[#allocation3 + $0x8] sm:$0xff] %v624_v1 }
 0x287   : > { %625 = vst [vmem:[#allocation3] sm:$0xff] %v623_v3 }
 0x288 PF: > { %v1928_v4 = vld [vmem:[%s2693_s4] sm:$0xff]   ;;  %v2133_v5 = vmov 0.0   ;;  %v1929_v6 = vld [vmem:[%s2693_s4 + $0x8] sm:$0xff]   ;;  %vm2134_vm1 = vmmov 0   ;;  %s1597_s11 = sshll.u32 %s2106_s19, 4  ;;  %vm777_vm2 = vcmask 130048  }
 0x289   : > { %1701 = vmatprep.subr.bf16.mxu1 %v2133_v5  ;;  %1717 = vmatprep.subr.bf16.mxu0 %v2133_v5  ;;  %s628_s24 = sshra.s32 %s1597_s11, 4  ;;  %s2135_s8 = smov 64   ;;  %vm649_vm3 = vcmask 261120   ;;  %v1930_v17 = vld [vmem:[%s2695_s6] sm:$0xff]   ;;  %v1931_v29 = vld [vmem:[%s2695_s6 + $0x8] sm:$0xff]   ;;  %vm1350_vm4 = vcmask 392192  }
 0x28a   : > { %1702 = vmatpush3.bf16.msra.mxu1 %v1928_v4  ;;  %1705 = vmatprep.mubr.msk.bf16.mxu1 %vm2134_vm1, %v2133_v5  ;;  %s1598_s10 = sshll.u32 %s628_s24, 3  ;;  %s2136_s18 = smov 112   ;;  %v1636_v18 = vld [vmem:[%s2386_s29] sm:$0xff]   ;;  %v1651_v53 = vld [vmem:[%s2386_s29 + $0x8] sm:$0xff]   ;;  %vm1395_vm5 = vcmask 523264  }
 0x28b   : > { %1703 = vmatprep.subr.bf16.mxu1 %v2133_v5  ;;  %1721 = vmatprep.mubr.msk.bf16.mxu0 %vm2134_vm1, %v2133_v5  ;;  %s631_s13 = scalar_lea.vmem [#allocation2], %s1598_s10  ;;  %v1637_v19 = vunpack.c.l.bf16 %v1636_v18  ;;  %v1638_v20 = vunpack.c.h.bf16 %v1636_v18  ;;  %s2137_s9 = smov 48   ;;  %v1641_v54 = vunpack.c.l.bf16 %v1651_v53  ;;  %v1642_v55 = vunpack.c.h.bf16 %v1651_v53 }
 0x28c   : > { %v632_v10 = vld [vmem:[%s631_s13] sm:$0xff]  ;;  %s2138_s16 = smov 96   ;;  %s2139_s12 = smov 32  }
 0x28d   : > { %v2437_v9 = vld [vmem:[#allocation3 + $0x8] sm:$0xff]  ;;  %s2140_s30 = smov 80   ;;  %s2141_s11 = smov 16  }
 0x28e   : > { %v2431_v7 = vld [vmem:[#allocation3] sm:$0xff]  ;;  %1704 = vmatpush3.bf16.msra.mxu1 %v1929_v6  ;;  %v785_v11 = vsel %vm777_vm2, %v2437_v9, 0  ;;  %s2736_s13 = sld [smem:[#allocation27_spill]]  ;;  %s1458_s7 = sshll.u32 %s2393_s28, 4  ;;  %s2622_s7 = int_to_ptr.vmem [resolvable:$true] %s1458_s7 }
 0x28f   : > { %v782_v8 = vsel %vm777_vm2, %v2431_v7, 0  ;;  %850 = vrot.lane.b32.xlu1 %v2431_v7, %s2135_s8  ;;  %1709 = vmatprep.subr.bf16.mxu1 %v2133_v5  ;;  %s2737_s0 = sld [smem:[#allocation28_spill]]  ;;  %p2738_p0 = scmp.ne.s32.totalorder %s2727_s27, 0 }
 0x290   : > { %1718 = vmatpush3.bf16.xpose.msra.mxu0 %v782_v8 }
 0x291   : > { %1719 = vmatprep.subr.bf16.mxu0 %v2133_v5  ;;  %1706 = vmatmul.mubr.msk.bf16.vlgmr.msra.gmra.mrb[0].mxu1 %vm649_vm3, %v632_v10 }
 0x292   : > { %1713 = vmatprep.mubr.msk.bf16.mxu1 %vm2134_vm1, %v2133_v5  ;;  %1710 = vmatpush3.bf16.msra.mxu1 %v1930_v17 }
 0x293   : > { %852 = vrot.lane.b32.xlu1 %v2437_v9, %s2135_s8  ;;  %1711 = vmatprep.subr.bf16.mxu1 %v2133_v5  ;;  %s2733_s8 = sld [smem:[#allocation26_spill]] }
 0x296   : > { %1712 = vmatpush3.bf16.msra.mxu1 %v1931_v29 }
 0x297   : > { %918 = vrot.lane.b32.xlu1 %v2437_v9, %s2136_s18  ;;  %1725 = vmatprep.subr.bf16.mxu1 %v2133_v5 }
 0x298   : > { %1720 = vmatpush3.bf16.xpose.msra.mxu0 %v785_v11 }
 0x299   : > { %1741 = vmatprep.subr.bf16.mxu0 %v2133_v5  ;;  %1714 = vmatmul.mubr.msk.bf16.vlgmr.msra.gmra.mrb[4].mxu1 %vm649_vm3, %v632_v10 }
 0x29a   : > { %1729 = vmatprep.mubr.msk.bf16.mxu1 %vm2134_vm1, %v2133_v5 }
 0x301   : > { %v851_v30 = vpop.permute.xlu1 %850 }
 0x302   : > { %1726 = vmatpush3.bf16.msra.mxu1 %v851_v30 }
 0x303   : > { %1727 = vmatprep.subr.bf16.mxu1 %v2133_v5 }
 0x305   : > { %v853_v31 = vpop.permute.xlu1 %852 }
 0x306   : > { %1728 = vmatpush3.bf16.msra.mxu1 %v853_v31 }
 0x307   : > { %1733 = vmatprep.subr.bf16.mxu1 %v2133_v5 }
 0x309   : > { %v919_v41 = vpop.permute.xlu1 %918 }
 0x30a   : > { %v927_v42 = vsel %vm777_vm2, %v919_v41, 0 }
 0x364   : > { %v687_v12 = vpop.f32.mrb[0].mxu1 }
 0x365   : > { %v1707_v13 = vpop.f32.mrb[1].mxu1 }
 0x366   : > { %v690_v14 = vpop.f32.mrb[2].mxu1 }
 0x367   : > { %v2452_v15 = vpack.c.bf16 %v690_v14, %v687_v12  ;;  %v1708_v16 = vpop.f32.mrb[3].mxu1 }
 0x369   : > { %912 = vrot.lane.b32.xlu1 %v2452_v15, %s2136_s18  ;;  %1722 = vmatmul.mubr.msk.bf16.vlgmr.msra.gmra.mrb[0].mxu0 %vm777_vm2, %v2452_v15 }
 0x36a   : > { %1745 = vmatprep.mubr.msk.bf16.mxu0 %vm2134_vm1, %v2133_v5 }
 0x36c   : > { %v2493_v44 = vpop.f32.mrb[4].mxu1 }
 0x36d   : > { %990 = vrot.lane.b32.xlu1 %v2431_v7, %s2137_s9  ;;  %v1715_v45 = vpop.f32.mrb[5].mxu1 }
 0x36e   : > { %v2495_v46 = vpop.f32.mrb[6].mxu1 }
 0x36f   : > { %v1716_v47 = vpop.f32.mrb[7].mxu1 }
 0x3db   : > { %v913_v43 = vpop.permute.xlu1 %912 }
 0x3df   : > { %v991_v48 = vpop.permute.xlu1 %990 }
 0x3e0   : > { %1742 = vmatpush3.bf16.msra.mxu0 %v991_v48 }
 0x3e1   : > { %1743 = vmatprep.subr.bf16.mxu0 %v2133_v5 }
 0x43c   : > { %v821_v21 = vpop.f32.mrb[0].mxu0 }
 0x43d   : > { %v822_v22 = vadd.f32 %v1637_v19, %v821_v21  ;;  %v1723_v23 = vpop.f32.mrb[1].mxu0  ;;  %v1652_v21 = vld [vmem:[%s2386_s29 + $0x10] sm:$0xff]  }
 0x43e   : > { %v824_v24 = vpop.f32.mrb[2].mxu0  ;;  %v1646_v23 = vunpack.c.h.bf16 %v1652_v21 }
 0x43f   : > { %v825_v25 = vadd.f32 %v1638_v20, %v824_v24  ;;  %v1724_v26 = vpop.f32.mrb[3].mxu0  ;;  %v828_v27 = vsel %vm649_vm3, %v822_v22, -inf }
 0x440   : > { %829 = vmax.xlane.f32.xlu0 %v828_v27 }
 0x441   : > { %v831_v28 = vsel %vm649_vm3, %v825_v25, -inf }
 0x444   : > { %832 = vmax.xlane.f32.xlu0 %v831_v28 }
 0x45a   : > { %916 = vrot.lane.b32.xlu0 %v2431_v7, %s2136_s18 }
 0x4cd   : > { %v830_v32 = vpop.xlane.xlu0 %829 }
 0x4ce   : > { %v834_v34 = vsub.f32 %v822_v22, %v830_v32  ;;  %v1645_v22 = vunpack.c.l.bf16 %v1652_v21 }
 0x4d1   : > { %v833_v33 = vpop.xlane.xlu0 %832 }
 0x4d2   : > { %v835_v35 = vsub.f32 %v825_v25, %v833_v33 }
 0x4d4   : > { %v836_v36 = vpack.c.bf16 %v835_v35, %v834_v34 }
 0x4d5   : > { %v917_v38 = vpop.permute.xlu0 %916 }
 0x4d6   : > { %v838_v37 = vmul.bf16 1069105081, %v836_v36  ;;  %v924_v39 = vsel %vm777_vm2, %v917_v38, 0 }
 0x4d8   : > { %1936 = vpow.bf16 %v838_v37 }
 0x4e3   : > { %v2481_v40 = vpop.eup %1936 }
 0x4e4   : > { %1730 = vmatmul.mubr.msk.bf16.vlgmr.msra.gmra.mrb[8].mxu1 %vm649_vm3, %v2481_v40 }
 0x4e5   : > { %1734 = vmatpush3.bf16.xpose.msra.mxu1 %v924_v39  ;;  %1737 = vmatprep.mubr.msk.bf16.mxu1 %vm2134_vm1, %v2133_v5 }
 0x4e6   : > { %1735 = vmatprep.subr.bf16.mxu1 %v2133_v5 }
 0x4ed   : > { %1736 = vmatpush3.bf16.xpose.msra.mxu1 %v927_v42 }
 0x4ee   : > { %1757 = vmatprep.subr.bf16.mxu1 %v2133_v5 }
 0x4f4   : > { %1738 = vmatmul.mubr.msk.bf16.vlgmr.msra.gmra.mrb[12].mxu1 %vm777_vm2, %v913_v43 }
 0x4f5   : > { %1761 = vmatprep.mubr.msk.bf16.mxu1 %vm2134_vm1, %v2133_v5 }
 0x5b7   : > { %v2498_v49 = vpop.f32.mrb[8].mxu1 }
 0x5b8   : > { %v1731_v50 = vpop.f32.mrb[9].mxu1 }
 0x5b9   : > { %v2500_v51 = vpop.f32.mrb[10].mxu1 }
 0x5ba   : > { %v1732_v52 = vpop.f32.mrb[11].mxu1 }
 0x5c7   : > { %v963_v56 = vpop.f32.mrb[12].mxu1 }
 0x5c8   : > { %v964_v57 = vadd.f32 %v1641_v54, %v963_v56  ;;  %v1739_v58 = vpop.f32.mrb[13].mxu1  ;;  %v1653_v54 = vld [vmem:[%s2386_s29 + $0x18] sm:$0xff]  }
 0x5c9   : > { %v966_v59 = vpop.f32.mrb[14].mxu1  ;;  %v1650_v56 = vunpack.c.h.bf16 %v1653_v54 }
 0x5ca   : > { %v967_v60 = vadd.f32 %v1642_v55, %v966_v59  ;;  %v1740_v61 = vpop.f32.mrb[15].mxu1  ;;  %v970_v62 = vsel %vm649_vm3, %v964_v57, -inf  ;;  %v1649_v55 = vunpack.c.l.bf16 %v1653_v54 }
 0x5cb   : > { %971 = vmax.xlane.f32.xlu1 %v970_v62 }
 0x5cc   : > { %v973_v63 = vsel %vm649_vm3, %v967_v60, -inf }
 0x5cd   : > { %974 = vmax.xlane.f32.xlu0 %v973_v63 }
 0x5dc   : > { %1055 = vrot.lane.b32.xlu1 %v2431_v7, %s2138_s16 }
 0x5e0   : > { %1057 = vrot.lane.b32.xlu1 %v2437_v9, %s2138_s16 }
 0x5e3   : > { %992 = vrot.lane.b32.xlu0 %v2437_v9, %s2137_s9 }
 0x5e4   : > { %1051 = vrot.lane.b32.xlu1 %v2452_v15, %s2138_s16 }
 0x658   : > { %v972_v0 = vpop.xlane.xlu1 %971 }
 0x659   : > { %v976_v2 = vsub.f32 %v964_v57, %v972_v0 }
 0x65a   : > { %v975_v1 = vpop.xlane.xlu0 %974 }
 0x65b   : > { %v977_v3 = vsub.f32 %v967_v60, %v975_v1 }
 0x65c   : > { %v1056_v10 = vpop.permute.xlu1 %1055 }
 0x65d   : > { %v978_v4 = vpack.c.bf16 %v977_v3, %v976_v2  ;;  %v1063_v11 = vsel %vm777_vm2, %v1056_v10, 0 }
 0x65e   : > { %v993_v6 = vpop.permute.xlu0 %992 }
 0x65f   : > { %v980_v8 = vmul.bf16 1069105081, %v978_v4  ;;  %1744 = vmatpush3.bf16.msra.mxu0 %v993_v6 }
 0x660   : > { %1749 = vmatprep.subr.bf16.mxu0 %v2133_v5  ;;  %v1058_v13 = vpop.permute.xlu1 %1057 }
 0x661   : > { %1938 = vpow.bf16 %v980_v8  ;;  %v1066_v14 = vsel %vm777_vm2, %v1058_v13, 0 }
 0x664   : > { %v1052_v16 = vpop.permute.xlu1 %1051 }
 0x66c   : > { %v2512_v12 = vpop.eup %1938 }
 0x66d   : > { %1746 = vmatmul.mubr.msk.bf16.vlgmr.msra.gmra.mrb[4].mxu0 %vm649_vm3, %v2512_v12  ;;  %v982_v1 = vunpack.c.l.bf16 %v2512_v12  ;;  %v983_v2 = vunpack.c.h.bf16 %v2512_v12 }
 0x66e   : > { %1750 = vmatpush3.bf16.xpose.msra.mxu0 %v1063_v11  ;;  %1753 = vmatprep.mubr.msk.bf16.mxu0 %vm2134_vm1, %v2133_v5 }
 0x66f   : > { %1751 = vmatprep.subr.bf16.mxu0 %v2133_v5  ;;  %v984_v3 = vsel %vm649_vm3, %v982_v1, 0.0  ;;  %v987_v6 = vsel %vm649_vm3, %v983_v2, 0.0 }
 0x676   : > { %1752 = vmatpush3.bf16.xpose.msra.mxu0 %v1066_v14 }
 0x677   : > { %1773 = vmatprep.subr.bf16.mxu0 %v2133_v5 }
 0x67d   : > { %1754 = vmatmul.mubr.msk.bf16.vlgmr.msra.gmra.mrb[8].mxu0 %vm777_vm2, %v1052_v16 }
 0x67e   : > { %1777 = vmatprep.mubr.msk.bf16.mxu0 %vm2134_vm1, %v2133_v5 }
 0x740   : > { %v2524_v17 = vpop.f32.mrb[4].mxu0 }
 0x741   : > { %v1747_v18 = vpop.f32.mrb[5].mxu0 }
 0x742   : > { %v2526_v19 = vpop.f32.mrb[6].mxu0 }
 0x743   : > { %v1748_v20 = vpop.f32.mrb[7].mxu0 }
 0x750   : > { %v1102_v24 = vpop.f32.mrb[8].mxu0 }
 0x751   : > { %v1103_v25 = vadd.f32 %v1645_v22, %v1102_v24  ;;  %v1755_v26 = vpop.f32.mrb[9].mxu0 }
 0x752   : > { %v1105_v27 = vpop.f32.mrb[10].mxu0  ;;  %v841_v26 = vunpack.c.h.bf16 %v2481_v40 }
 0x753   : > { %v1106_v28 = vadd.f32 %v1646_v23, %v1105_v27  ;;  %v1756_v29 = vpop.f32.mrb[11].mxu0  ;;  %v1109_v30 = vsel %vm649_vm3, %v1103_v25, -inf  ;;  %v840_v27 = vunpack.c.l.bf16 %v2481_v40 }
 0x754   : > { %1110 = vmax.xlane.f32.xlu1 %v1109_v30 }
 0x755   : > { %v1112_v31 = vsel %vm649_vm3, %v1106_v28, -inf  ;;  %v842_v29 = vsel %vm649_vm3, %v840_v27, 0.0 }
 0x756   : > { %1113 = vmax.xlane.f32.xlu0 %v1112_v31 }
 0x765   : > { %1131 = vrot.lane.b32.xlu1 %v2437_v9, %s2139_s12 }
 0x769   : > { %1194 = vrot.lane.b32.xlu1 %v2431_v7, %s2140_s30 }
 0x76c   : > { %1129 = vrot.lane.b32.xlu0 %v2431_v7, %s2139_s12 }
 0x76d   : > { %1190 = vrot.lane.b32.xlu1 %v2452_v15, %s2140_s30 }
 0x770   : > { %1196 = vrot.lane.b32.xlu0 %v2437_v9, %s2140_s30  ;;  %s1629_s30 = sshll.u32 %s2106_s19, 1  ;;  %s1443_s19 = scalar_lea.sflag [#allocation6], %s2382_s20 }
 0x7e1   : > { %v1111_v32 = vpop.xlane.xlu1 %1110 }
 0x7e2   : > { %v1115_v34 = vsub.f32 %v1103_v25, %v1111_v32 }
 0x7e3   : > { %v1114_v33 = vpop.xlane.xlu0 %1113 }
 0x7e4   : > { %v1116_v35 = vsub.f32 %v1106_v28, %v1114_v33  ;;  %v845_v28 = vsel %vm649_vm3, %v841_v26, 0.0 }
 0x7e5   : > { %v1132_v39 = vpop.permute.xlu1 %1131 }
 0x7e6   : > { %v1117_v36 = vpack.c.bf16 %v1116_v35, %v1115_v34 }
 0x7e7   : > { %v1130_v37 = vpop.permute.xlu0 %1129 }
 0x7e8   : > { %v1119_v38 = vmul.bf16 1069105081, %v1117_v36  ;;  %1758 = vmatpush3.bf16.msra.mxu1 %v1130_v37 }
 0x7e9   : > { %1759 = vmatprep.subr.bf16.mxu1 %v2133_v5  ;;  %v1195_v41 = vpop.permute.xlu1 %1194 }
 0x7ea   : > { %1940 = vpow.bf16 %v1119_v38  ;;  %v1202_v15 = vsel %vm777_vm2, %v1195_v41, 0 }
 0x7eb   : > { %v1197_v43 = vpop.permute.xlu0 %1196 }
 0x7ec   : > { %1760 = vmatpush3.bf16.msra.mxu1 %v1132_v39  ;;  %v1205_v45 = vsel %vm777_vm2, %v1197_v43, 0  ;;  %v1934_v43 = vld [vmem:[%s2733_s8 + $0x10] sm:$0xff]  }
 0x7ed   : > { %1765 = vmatprep.subr.bf16.mxu1 %v2133_v5  ;;  %v1191_v47 = vpop.permute.xlu1 %1190 }
 0x7f5   : > { %v1941_v42 = vpop.eup %1940 }
 0x7f6   : > { %1762 = vmatmul.mubr.msk.bf16.vlgmr.msra.gmra.mrb[16].mxu1 %vm649_vm3, %v1941_v42  ;;  %v1121_v4 = vunpack.c.l.bf16 %v1941_v42  ;;  %v1122_v10 = vunpack.c.h.bf16 %v1941_v42 }
 0x7f7   : > { %1766 = vmatpush3.bf16.xpose.msra.mxu1 %v1202_v15  ;;  %1769 = vmatprep.mubr.msk.bf16.mxu1 %vm2134_vm1, %v2133_v5 }
 0x7f8   : > { %1767 = vmatprep.subr.bf16.mxu1 %v2133_v5  ;;  %v1123_v8 = vsel %vm649_vm3, %v1121_v4, 0.0 }
 0x7ff   : > { %1768 = vmatpush3.bf16.xpose.msra.mxu1 %v1205_v45  ;;  %v1935_v45 = vld [vmem:[%s2733_s8 + $0x18] sm:$0xff]  }
 0x806   : > { %1770 = vmatmul.mubr.msk.bf16.vlgmr.msra.gmra.mrb[20].mxu1 %vm777_vm2, %v1191_v47 }
 0x8c9   : > { %v2547_v48 = vpop.f32.mrb[16].mxu1 }
 0x8ca   : > { %v1763_v50 = vpop.f32.mrb[17].mxu1 }
 0x8cb   : > { %v2549_v52 = vpop.f32.mrb[18].mxu1 }
 0x8cc   : > { %v1764_v53 = vpop.f32.mrb[19].mxu1 }
 0x8d9   : > { %v1241_v57 = vpop.f32.mrb[20].mxu1 }
 0x8da   : > { %v1242_v58 = vadd.f32 %v1649_v55, %v1241_v57  ;;  %v1771_v59 = vpop.f32.mrb[21].mxu1 }
 0x8db   : > { %v1244_v60 = vpop.f32.mrb[22].mxu1 }
 0x8dc   : > { %v1245_v61 = vadd.f32 %v1650_v56, %v1244_v60  ;;  %v1772_v62 = vpop.f32.mrb[23].mxu1  ;;  %v1248_v63 = vsel %vm649_vm3, %v1242_v58, -inf }
 0x8dd   : > { %1249 = vmax.xlane.f32.xlu0 %v1248_v63 }
 0x8de   : > { %v1251_v0 = vsel %vm649_vm3, %v1245_v61, -inf }
 0x8df   : > { %1252 = vmax.xlane.f32.xlu1 %v1251_v0 }
 0x8f0   : > { %1270 = vrot.lane.b32.xlu1 %v2437_v9, %s2141_s11  ;;  %v1126_v9 = vsel %vm649_vm3, %v1122_v10, 0.0 }
 0x8f3   : > { %1268 = vrot.lane.b32.xlu0 %v2431_v7, %s2141_s11 }
 0x912   : > { %985 = vadd.xlane.f32.xlu0 %v984_v3 }
 0x914   : > { %988 = vadd.xlane.f32.xlu1 %v987_v6 }
 0x916   : > { %1124 = vadd.xlane.f32.xlu0 %v1123_v8 }
 0x91a   : > { %1127 = vadd.xlane.f32.xlu0 %v1126_v9 }
 0x96a   : > { %v1250_v11 = vpop.xlane.xlu0 %1249 }
 0x96b   : > { %v1254_v13 = vsub.f32 %v1242_v58, %v1250_v11 }
 0x96c   : > { %v1253_v7 = vpop.xlane.xlu1 %1252 }
 0x96d   : > { %v1255_v14 = vsub.f32 %v1245_v61, %v1253_v7 }
 0x96e   : > { %v1269_v16 = vpop.permute.xlu0 %1268 }
 0x96f   : > { %v1256_v12 = vpack.c.bf16 %v1255_v14, %v1254_v13  ;;  %1774 = vmatpush3.bf16.msra.mxu0 %v1269_v16 }
 0x970   : > { %1775 = vmatprep.subr.bf16.mxu0 %v2133_v5  ;;  %v1271_v18 = vpop.permute.xlu1 %1270 }
 0x971   : > { %v1258_v20 = vmul.bf16 1069105081, %v1256_v12 }
 0x973   : > { %1942 = vpow.bf16 %v1258_v20  ;;  %1776 = vmatpush3.bf16.msra.mxu0 %v1271_v18 }
 0x974   : > { %1781 = vmatprep.subr.bf16.mxu0 %v2133_v5 }
 0x97e   : > { %v1943_v21 = vpop.eup %1942 }
 0x97f   : > { %1778 = vmatmul.mubr.msk.bf16.vlgmr.msra.gmra.mrb[12].mxu0 %vm649_vm3, %v1943_v21  ;;  %v1261_v22 = vunpack.c.h.bf16 %v1943_v21  ;;  %v1260_v23 = vunpack.c.l.bf16 %v1943_v21 }
 0x980   : > { %1789 = vmatprep.mubr.msk.bf16.mxu0 %vm2134_vm1, %v2133_v5 }
 0x981   : > { %v1265_v24 = vsel %vm649_vm3, %v1261_v22, 0.0  ;;  %v1262_v25 = vsel %vm649_vm3, %v1260_v23, 0.0 }
 0x982   : > { %1266 = vadd.xlane.f32.xlu0 %v1265_v24  ;;  %1263 = vadd.xlane.f32.xlu1 %v1262_v25  ;;  %v1622_v24 = vld [vmem:[%s2736_s13] ss:$0 sm:$0xff] }
 0x986   : > { %846 = vadd.xlane.f32.xlu0 %v845_v28  ;;  %843 = vadd.xlane.f32.xlu1 %v842_v29 }
 0x99f   : > { %v986_v30 = vpop.xlane.xlu0 %985 }
 0x9a0   : > { %1944 = vrcp.f32 %v986_v30 }
 0x9a1   : > { %v989_v31 = vpop.xlane.xlu1 %988 }
 0x9a2   : > { %1946 = vrcp.f32 %v989_v31 }
 0x9a3   : > { %v1125_v32 = vpop.xlane.xlu0 %1124 }
 0x9a4   : > { %1948 = vrcp.f32 %v1125_v32 }
 0x9a7   : > { %v1128_v33 = vpop.xlane.xlu0 %1127 }
 0x9a8   : > { %1950 = vrcp.f32 %v1128_v33 }
 0x9aa   : > { %v1945_v34 = vpop.eup %1944 }
 0x9ab   : > { %v1041_v35 = vmul.f32 %v1945_v34, %v2524_v17  ;;  %v1932_v17 = vld [vmem:[%s2733_s8] sm:$0xff]  }
 0x9ac   : > { %v1947_v40 = vpop.eup %1946  ;;  %1782 = vmatpush3.bf16.msra.mxu0 %v1932_v17 }
 0x9ad   : > { %1324 = vrot.lane.b32.xlu1 %v1041_v35, %s2141_s11  ;;  %v1043_v36 = vmul.f32 %v1947_v40, %v2526_v19  ;;  %v1933_v19 = vld [vmem:[%s2733_s8 + $0x8] sm:$0xff]   ;;  %1783 = vmatprep.subr.bf16.mxu0 %v2133_v5 }
 0x9ae   : > { %v1949_v37 = vpop.eup %1948 }
 0x9af   : > { %1326 = vrot.lane.b32.xlu0 %v1043_v36, %s2141_s11  ;;  %v1180_v38 = vmul.f32 %v1949_v37, %v2547_v48 }
 0x9b0   : > { %1784 = vmatpush3.bf16.msra.mxu0 %v1933_v19 }
 0x9b1   : > { %1332 = vrot.lane.b32.xlu1 %v1180_v38, %s2139_s12  ;;  %1785 = vmatprep.subr.bf16.mxu0 %v2133_v5 }
 0x9b2   : > { %v1951_v39 = vpop.eup %1950 }
 0x9b3   : > { %v1182_v41 = vmul.f32 %v1951_v39, %v2549_v52 }
 0x9b4   : > { %1786 = vmatpush3.bf16.msra.mxu0 %v1934_v43 }
 0x9b5   : > { %1334 = vrot.lane.b32.xlu1 %v1182_v41, %s2139_s12  ;;  %1787 = vmatprep.subr.bf16.mxu0 %v2133_v5  ;;  %s2734_s12 = sld [smem:[#allocation25_spill]] }
 0x9b8   : > { %1788 = vmatpush3.bf16.msra.mxu0 %v1935_v45 }
 0x9bb   : > { %v1602_v5 = vld [vmem:[%s2734_s12] ss:$0 sm:$0xff]  ;;  %s1996_s12 = scalar_lea.vmem %s2622_s7, 256 }
 0x9bc   : > { %v753_v57 = vadd.f32 %v1602_v5, %v2493_v44  ;;  %v756_v58 = vadd.f32 %v1602_v5, %v2495_v46  ;;  %p1997_p9 = scmp.ne.s32.totalorder %s2622_s7, %s1996_s12 }
 0x9be   : > { %v1606_v59 = vmul.f32 -1.442695, %v753_v57  ;;  %v1607_v60 = vmul.f32 -1.442695, %v756_v58  ;;  %p1998_p1 = pnand %p1997_p9, %p2738_p0 }
 0x9c0   : > { %p1999_p2 = pneg %p1998_p1 }
 0xa0f   : > { %v1264_v15 = vpop.xlane.xlu1 %1263  ;;  %v1267_v42 = vpop.xlane.xlu0 %1266 }
 0xa10   : > { %1952 = vrcp.f32 %v1264_v15 }
 0xa11   : > { %1954 = vrcp.f32 %v1267_v42 }
 0xa12   : > { %1956 = vpow2.f32 %v1606_v59 }
 0xa13   : > { %1958 = vpow2.f32 %v1607_v60  ;;  %v844_v61 = vpop.xlane.xlu1 %843  ;;  %v847_v62 = vpop.xlane.xlu0 %846 }
 0xa14   : > { %1960 = vrcp.f32 %v844_v61 }
 0xa15   : > { %1962 = vrcp.f32 %v847_v62 }
 0xa1a   : > { %v1953_v47 = vpop.eup %1952 }
 0xa1b   : > { %v1955_v53 = vpop.eup %1954 }
 0xa1c   : > { %v1957_v63 = vpop.eup %1956 }
 0xa1d   : > { %v1959_v0 = vpop.eup %1958  ;;  %v765_v2 = vadd.f32 1.0, %v1957_v63 }
 0xa1e   : > { %v766_v3 = vadd.f32 1.0, %v1959_v0  ;;  %v1961_v4 = vpop.eup %1960 }
 0xa1f   : > { %v1325_v1 = vpop.permute.xlu1 %1324  ;;  %1964 = vrcp.f32 %v765_v2  ;;  %v1963_v44 = vpop.eup %1962  ;;  %v901_v46 = vmul.f32 %v1961_v4, %v2498_v49 }
 0xa20   : > { %1966 = vrcp.f32 %v766_v3  ;;  %v903_v10 = vmul.f32 %v1963_v44, %v2500_v51 }
 0xa21   : > { %v1327_v8 = vpop.permute.xlu0 %1326  ;;  %v1346_v11 = vsel %vm777_vm2, %v901_v46, %v1325_v1 }
 0xa22   : > { %v1347_v16 = vsel %vm777_vm2, %v903_v10, %v1327_v8 }
 0xa23   : > { %v1333_v6 = vpop.permute.xlu1 %1332 }
 0xa24   : > { %v1348_v7 = vsel %vm649_vm3, %v1346_v11, %v1333_v6 }
 0xa27   : > { %v1335_v9 = vpop.permute.xlu1 %1334 }
 0xa28   : > { %v1349_v18 = vsel %vm649_vm3, %v1347_v16, %v1335_v9 }
 0xa29   : > { %v1965_v14 = vpop.eup %1964 }
 0xa2a   : > { %v1967_v21 = vpop.eup %1966 }
 0xa52   : > { %v1311_v48 = vpop.f32.mrb[12].mxu0 }
 0xa53   : > { %v1319_v50 = vmul.f32 %v1953_v47, %v1311_v48  ;;  %v1779_v52 = vpop.f32.mrb[13].mxu0 }
 0xa54   : > { %v1314_v54 = vpop.f32.mrb[14].mxu0 }
 0xa55   : > { %v1321_v55 = vmul.f32 %v1955_v53, %v1314_v54  ;;  %v1780_v56 = vpop.f32.mrb[15].mxu0  ;;  %1340 = vrot.lane.b32.xlu0 %v1319_v50, %s2137_s9 }
 0xa57   : > { %1342 = vrot.lane.b32.xlu1 %v1321_v55, %s2137_s9  ;;  %s2735_s9 = sld [smem:[#allocation18_spill]] }
 0xa5d   : > { %s1630_s11 = sshll.u32 %s2735_s9, 2  ;;  %s2142_s9 = smov [#allocation9]  }
 0xa5e   : > { %s1455_s29 = sadd.s32 %s1630_s11, %s1629_s30  ;;  %s2000_s30 = sshll.u32 %s2142_s9, 4  ;;  %s2001_s30 = int_to_ptr.vmem [resolvable:$false] %s2000_s30 }
 0xa5f   : > { %s1631_s18 = sshll.u32 %s1455_s29, 7  ;;  %s2002_s11 = scalar_lea.vmem %s2001_s30, 512 }
 0xa60   : > { %s2620_s16 = scalar_lea.hbm %s2737_s0, %s1631_s18  ;;  %p2003_p6 = scmp.lt.s32.totalorder %s2622_s7, %s2001_s30 }
 0xa61   : > { %p2004_p8 = scmp.lt.s32.totalorder %s2002_s11, %s1996_s12 }
 0xa63   : > { %p2005_p10 = por %p2004_p8, %p2003_p6 }
 0xa65   : > { %p2006_p11 = pnand %p2005_p10, %p1999_p2 }
 0xac7   : > { %v1341_v13 = vpop.permute.xlu0 %1340 }
 0xac8   : > { %v1351_v12 = vsel %vm1350_vm4, %v1348_v7, %v1341_v13 }
 0xac9   : > { %v1353_v49 = vmul.f32 %v1965_v14, %v1351_v12  ;;  %v1343_v20 = vpop.permute.xlu1 %1342 }
 0xaca   : > { %v1352_v51 = vsel %vm1350_vm4, %v1349_v18, %v1343_v20 }
 0xacb   : > { %v1354_v22 = vmul.f32 %v1967_v21, %v1352_v51 }
 0xacd   : > { %v1355_v23 = vpack.c.bf16 %v1354_v22, %v1353_v49 }
 0xacf   : > { %1790 = vmatmul.mubr.msk.bf16.vlgmr.msra.gmra.mrb[16].mxu0 %vm1395_vm5, %v1355_v23 }
 0xba2   : > { %v1433_v25 = vpop.f32.mrb[16].mxu0 }
 0xba3   : > { %v1434_v26 = vadd.f32 %v1622_v24, %v1433_v25  ;;  %v1791_v27 = vpop.f32.mrb[17].mxu0 }
 0xba4   : > { %v1436_v28 = vpop.f32.mrb[18].mxu0 }
 0xba5   : > { %1440 = vst.msk [vmem:[%s2393_s28] sm:$0xff] %vm649_vm3, %v1434_v26  ;;  %v1437_v29 = vadd.f32 %v1622_v24, %v1436_v28  ;;  %v1792_v30 = vpop.f32.mrb[19].mxu0 }
 0xba7   : > { %1441 = vst.msk [vmem:[%s2393_s28 + $0x8] sm:$0xff] %vm649_vm3, %v1437_v29 }
 0xba8   : > { %2009 = shalt.err (!%p2006_p11)
}
 0xba9   : > { %s2010_s28 = scalar_lea.hbm %s2620_s16, 256  ;;  %s2014_s10 = scalar_lea.hbm %s2737_s0, 1024 }
 0xbaa   : > { %p2011_p3 = scmp.ne.s32.totalorder %s2620_s16, %s2010_s28  ;;  %p2015_p4 = scmp.lt.u32.totalorder %s2620_s16, %s2737_s0 }
 0xbab   : > { %p2016_p12 = scmp.lt.u32.totalorder %s2014_s10, %s2010_s28  ;;  %p2018_p9 = scmp.lt.u32.totalorder %s2010_s28, %s2620_s16 }
 0xbac   : > { %p2012_p7 = pnand %p2011_p3, %p2738_p0 }
 0xbad   : > { %p2017_p5 = por %p2016_p12, %p2015_p4 }
 0xbae   : > { %p2013_p13 = pneg %p2012_p7 }
 0xbaf   : > { %p2019_p1 = por %p2018_p9, %p2017_p5 }
 0xbb1   : > { %p2020_p2 = pnand %p2019_p1, %p2013_p13 }
 0xbb3   : > { %2023 = shalt.err (!%p2020_p2)
}
 0xbb4   : > { %s2143_s26 = smov 128   ;;  %s2144_s25 = smov 8  }
 0xbb5   : > { %1804 = dma.vmem_to_hbm [thread:$0]  (%p2738_p0), %s2622_s7, 256, %s2620_s16, %s1443_s19, %s2143_s26, %s2143_s26, %s2144_s25  }
 0xbb6 PF: > { %s2739_s12 = sld [smem:[#allocation16_spill]]  ;;  %s2740_s9 = sld [smem:[#allocation23_spill]] }
 0xbb7   : > { %p1810_p6 = scmp.ge.s32.totalorder %s2122_s23, 2 }
 0xbbc   : > { %s1473_s30 = sand.u32 1, %s2739_s12   ;;  %p2741_p8 = scmp.ne.s32.totalorder %s2740_s9, 0 }
 0xbbd   : > { %s1474_s11 = scalar_lea.sflag [#allocation6], %s1473_s30 }
 0xbbe   : > { %p1807_p10 = pnand %p1810_p6, %p2741_p8 }
 0xbc0   : > { %2077 = dma.done.wait (!%p1807_p10), %s1474_s11, 256  }
 0xbc1   : > { %2079 = vsyncadd (!%p1807_p10), %s1474_s11, 4294967040  ;;  %s29_s23 = sadd.s32 1, %s2122_s23   ;;  %s2742_s28 = sld [smem:[#allocation22_spill]] }
 0xbc2   : > { %p26_p11 = scmp.ge.s32.totalorder %s29_s23, 6   ;;  %s2743_s27 = sld [smem:[#allocation17_spill]] }
 0xbc3   : > { %s2744_s18 = sld [smem:[#allocation21_spill]]  ;;  %s2745_s7 = sld [smem:[#allocation19_spill]] }
 0xbc4   : > { %s2746_s29 = sld [smem:[#allocation20_spill]]  ;;  %s2747_s13 = smov %s2086_s14 }
 0xbc5   : > { %s2748_s14 = smov %s2090_s15  ;;  %s2750_s16 = smov %s2098_s17 }
 0xbc6   : > { %s2752_s19 = smov %s2114_s21  ;;  %s2753_s20 = smov %s2118_s22 }
 0xbc7   : > { %s2749_s15 = smov %s2742_s28  ;;  %28 = sbr.rel (!%p26_p11) target bundleno = 17 (0x11), region = 131 }
 0xbc8   : > { %s2751_s17 = smov %s2743_s27 }
 0xbc9   : > { %s2754_s21 = smov %s2745_s7 }
 0xbca   : > { %s2755_s22 = smov %s2746_s29 }
 0xbce   :  { %1479 = vsyncpa [#allocation5], 1 }
 0xbcf   :  { %1481 = vsyncpa [#allocation5 + $0x1], 1 }
 0xbd0   :  { %1482 = vsyncpa [#allocation8], 1 }
 0xbd1   :  { %1484 = vsyncpa [#allocation8 + $0x1], 1 }
 0xbd2   :  { %1485 = vsyncpa [#allocation6], 1 }
 0xbd3   :  { %1487 = vsyncpa [#allocation6 + $0x1], 1 }

</bundles_post_ra>
